<compile_context>
chip_gen: v7x
topology: tpu7x:2x2x1
jax: 0.10.0
libtpu: 0.0.40
codegen_flags: <defaults>
</compile_context>

<pallas_src>
import functools
import math

import jax
import jax.numpy as jnp
from jax import lax
from jax.experimental import pallas as pl
from jax.experimental.pallas import tpu as pltpu


def _layernorm(x, w, b, eps=1e-5):
    mu = jnp.mean(x, axis=-1, keepdims=True)
    var = jnp.mean((x - mu) ** 2, axis=-1, keepdims=True)
    return (x - mu) * lax.rsqrt(var + eps) * w + b


def _gelu_exact(x):
    # PyTorch nn.GELU() default (erf-based, exact) -- kept for numerical parity.
    # (tanh-approx GELU would move this work to the EUP; flagged, not applied.)
    return 0.5 * x * (1.0 + lax.erf(x * (1.0 / math.sqrt(2.0))))


def block_kernel(x_ref,
                 ln1w_ref, ln1b_ref,
                 qkvw_ref, qkvb_ref,
                 projw_ref, projb_ref,
                 ln2w_ref, ln2b_ref,
                 fc1w_ref, fc1b_ref,
                 fc2w_ref, fc2b_ref,
                 out_ref,
                 qkv_s, oall_s,
                 *, heads, dim):
    hd = dim // heads
    scale = hd ** (-0.5)
    bf16 = jnp.bfloat16

    x = x_ref[...].astype(jnp.float32)                      # (N, C)

    # ---- norm1 + fused QKV projection (bf16 operands, f32 accumulation) ----
    xn = _layernorm(x, ln1w_ref[...], ln1b_ref[...])
    qkv = jnp.dot(xn.astype(bf16), qkvw_ref[...],
                  preferred_element_type=jnp.float32) + qkvb_ref[...]   # (N, 3C)

    # Stash q (pre-scaled), k, v in a bf16 VMEM scratch so the per-head
    # operands below are static ref views (no big f32 value kept live across
    # the unrolled head loop).
    qkv_s[0] = (qkv[:, :dim] * scale).astype(bf16)          # scale folded into Q
    qkv_s[1] = qkv[:, dim:2 * dim].astype(bf16)
    qkv_s[2] = qkv[:, 2 * dim:].astype(bf16)

    # ---- attention ----
    # Each head writes its (N, hd) output into its channel slice of oall_s;
    # ONE full-K matmul against projw follows the loop (MXU at full depth).
    # TODO(synk): switch to lax.fori_loop over heads at large head counts to
    # bound live ranges (heads is small here; trip count is static).
    for h in range(heads):
        lo = h * hd
        q = qkv_s[0, :, lo:lo + hd]                         # (N, hd) bf16
        k = qkv_s[1, :, lo:lo + hd]
        v = qkv_s[2, :, lo:lo + hd]
        # q @ k^T: contract last dims of both operands (no materialized k.T).
        s = lax.dot_general(q, k, (((1,), (1,)), ((), ())),
                            preferred_element_type=jnp.float32)          # (N, N)
        # manual softmax: exp on EUP, divide via approximate reciprocal (EUP).
        m = jnp.max(s, axis=-1, keepdims=True)
        e = jnp.exp(s - m)
        denom = jnp.sum(e, axis=-1, keepdims=True)
        p = (e * pl.reciprocal(denom, approx=True)).astype(bf16)
        o = jnp.dot(p, v, preferred_element_type=jnp.float32)            # (N, hd)
        oall_s[:, lo:lo + hd] = o.astype(bf16)

    # Single full-depth projection matmul over all heads at once.
    y = jnp.dot(oall_s[...], projw_ref[...],
                preferred_element_type=jnp.float32) + projb_ref[...]     # (N, C)

    x1 = x + y                                              # residual 1 (f32)

    # ---- norm2 + MLP ----
    x1n = _layernorm(x1, ln2w_ref[...], ln2b_ref[...])
    h1 = jnp.dot(x1n.astype(bf16), fc1w_ref[...],
                 preferred_element_type=jnp.float32) + fc1b_ref[...]
    h1 = _gelu_exact(h1)
    mlp = jnp.dot(h1.astype(bf16), fc2w_ref[...],
                  preferred_element_type=jnp.float32) + fc2b_ref[...]

    out_ref[...] = (x1 + mlp).astype(out_ref.dtype)


def block_forward(x, params, *, heads):
    B, N, C = x.shape
    (ln1w, ln1b, qkvw, qkvb, projw, projb,
     ln2w, ln2b, fc1w, fc1b, fc2w, fc2b) = params
    assert C % heads == 0, "heads must evenly divide dim"

    # Stream the large weight matrices as bf16 (f32 accumulation in-kernel).
    bf16 = jnp.bfloat16
    qkvw, projw, fc1w, fc2w = (qkvw.astype(bf16), projw.astype(bf16),
                               fc1w.astype(bf16), fc2w.astype(bf16))
    weights = (ln1w, ln1b, qkvw, qkvb, projw, projb,
               ln2w, ln2b, fc1w, fc1b, fc2w, fc2b)
    mlp_dim = fc1w.shape[1]

    # ---- per-generation scoped-VMEM budget ----
    nbytes = lambda a: a.size * a.dtype.itemsize
    weight_bytes = sum(nbytes(a) for a in weights)          # single-buffered
    io_bytes = 2 * 2 * N * C * x.dtype.itemsize             # x + out, double-buffered
    scratch_bytes = 4 * N * C * 2                           # qkv_s + oall_s (bf16)
    # f32 values live in the body: x, xn, qkv, y, x1, x1n, h1 (pre+post GELU),
    # mlp, plus one (N, N) scores/exp pair.
    act_bytes = 4 * (N * (9 * C + 2 * mlp_dim) + 2 * N * N)
    needed = weight_bytes + io_bytes + scratch_bytes + act_bytes
    try:
        capacity = int(pltpu.get_tpu_info().vmem_capacity_bytes)
    except Exception:
        capacity = 64 * 2 ** 20                             # conservative (v7x per-TC)
    vmem_limit = int(min(max(2 * needed, 32 * 2 ** 20), int(0.9 * capacity)))

    kernel = functools.partial(block_kernel, heads=heads, dim=C)

    def build(weight_pipe):
        def wspec(arr):
            if weight_pipe is None:
                return pl.BlockSpec(arr.shape, lambda b: (0, 0))
            # Constant index_map over the grid -> one fetch; don't waste a
            # second VMEM buffer on it.
            return pl.BlockSpec(arr.shape, lambda b: (0, 0),
                                pipeline_mode=weight_pipe)

        return pl.pallas_call(
            kernel,
            out_shape=jax.ShapeDtypeStruct((B, N, C), x.dtype),
            grid_spec=pltpu.PrefetchScalarGridSpec(
                num_scalar_prefetch=0,
                grid=(B,),
                in_specs=[
                    # leading None squeezes the size-1 batch dim out of the ref
                    pl.BlockSpec((None, N, C), lambda b: (b, 0, 0)),
                ] + [wspec(a) for a in weights],
                out_specs=pl.BlockSpec((None, N, C), lambda b: (b, 0, 0)),
                scratch_shapes=[
                    pltpu.VMEM((3, N, C), bf16),   # q (scaled) / k / v
                    pltpu.VMEM((N, C), bf16),      # concatenated head outputs
                ]),
            compiler_params=pltpu.CompilerParams(
                dimension_semantics=("parallel",),
                vmem_limit_bytes=vmem_limit),
        )

    args = (x,) + weights
    try:
        return build(pl.Buffered(1))(*args)
    except Exception:
        # Fallback for Pallas versions without BlockSpec pipeline_mode:
        # default double-buffered weights (correct, just more VMEM-hungry).
        return build(None)(*args)


def reference_forward(x, params, *, heads):
    """Pure-JAX reference mirroring the kernel's mixed precision."""
    (ln1w, ln1b, qkvw, qkvb, projw, projb,
     ln2w, ln2b, fc1w, fc1b, fc2w, fc2b) = params
    B, N, C = x.shape
    hd = C // heads
    scale = hd ** (-0.5)
    bf16 = jnp.bfloat16

    def mm(a, w):
        return jnp.dot(a.astype(bf16), w.astype(bf16),
                       preferred_element_type=jnp.float32)

    xn = _layernorm(x, ln1w, ln1b)
    qkv = mm(xn, qkvw) + qkvb                                    # (B, N, 3C)
    qkv = qkv.reshape(B, N, 3, heads, hd).transpose(2, 0, 3, 1, 4)
    q = (qkv[0] * scale).astype(bf16)                            # (B, H, N, hd)
    k = qkv[1].astype(bf16)
    v = qkv[2].astype(bf16)
    s = jnp.einsum('bhqd,bhkd->bhqk', q, k, preferred_element_type=jnp.float32)
    p = jax.nn.softmax(s, axis=-1).astype(bf16)
    o = jnp.einsum('bhqk,bhkd->bhqd', p, v, preferred_element_type=jnp.float32)
    o = o.transpose(0, 2, 1, 3).reshape(B, N, C)
    y = mm(o.astype(bf16), projw) + projb
    x1 = x + y
    x1n = _layernorm(x1, ln2w, ln2b)
    h = _gelu_exact(mm(x1n, fc1w) + fc1b)
    return x1 + mm(h, fc2w) + fc2b


def init_params(key, dim, heads, mlp_dim, dtype=jnp.float32):
    ks = jax.random.split(key, 8)
    init = lambda k, shape, fan_in: (jax.random.normal(k, shape, dtype)
                                     * (1.0 / math.sqrt(fan_in)))
    ln1w = jnp.ones((1, dim), dtype);  ln1b = jnp.zeros((1, dim), dtype)
    ln2w = jnp.ones((1, dim), dtype);  ln2b = jnp.zeros((1, dim), dtype)
    # Linear weights stored as [in, out] (pre-transposed vs PyTorch), biases (1, out)
    qkvw = init(ks[0], (dim, 3 * dim), dim)
    qkvb = init(ks[1], (1, 3 * dim), dim)
    projw = init(ks[2], (dim, dim), dim)
    projb = init(ks[3], (1, dim), dim)
    fc1w = init(ks[4], (dim, mlp_dim), dim)
    fc1b = init(ks[5], (1, mlp_dim), dim)
    fc2w = init(ks[6], (mlp_dim, dim), mlp_dim)
    fc2b = init(ks[7], (1, dim), mlp_dim)
    return (ln1w, ln1b, qkvw, qkvb, projw, projb,
            ln2w, ln2b, fc1w, fc1b, fc2w, fc2b)


if __name__ == "__main__":
    B, N, C = 2, 8, 32
    heads, mlp_dim = 4, 64

    key = jax.random.PRNGKey(0)
    kx, kp = jax.random.split(key)
    x = jax.random.normal(kx, (B, N, C), jnp.float32)
    params = init_params(kp, C, heads, mlp_dim)

    out = jax.block_until_ready(block_forward(x, params, heads=heads))
    ref = reference_forward(x, params, heads=heads)

    assert out.shape == (B, N, C)
    max_err = jnp.max(jnp.abs(out - ref))
    assert jnp.allclose(out, ref, atol=2e-2, rtol=2e-2), f"max err {max_err}"

    print("KERNEL_OK")
</pallas_src>

<mosaic_0001>
module attributes {stable_mosaic.version = 11 : i64} {
  func.func @block_kernel(%arg0: i32, %arg1: memref<1x8x32xf32, #tpu.memory_space<vmem>>, %arg2: memref<1x32xf32, #tpu.memory_space<vmem>>, %arg3: memref<1x32xf32, #tpu.memory_space<vmem>>, %arg4: memref<32x96xbf16, #tpu.memory_space<vmem>>, %arg5: memref<1x96xf32, #tpu.memory_space<vmem>>, %arg6: memref<32x32xbf16, #tpu.memory_space<vmem>>, %arg7: memref<1x32xf32, #tpu.memory_space<vmem>>, %arg8: memref<1x32xf32, #tpu.memory_space<vmem>>, %arg9: memref<1x32xf32, #tpu.memory_space<vmem>>, %arg10: memref<32x64xbf16, #tpu.memory_space<vmem>>, %arg11: memref<1x64xf32, #tpu.memory_space<vmem>>, %arg12: memref<64x32xbf16, #tpu.memory_space<vmem>>, %arg13: memref<1x32xf32, #tpu.memory_space<vmem>>, %arg14: memref<1x8x32xf32, #tpu.memory_space<vmem>>, %arg15: memref<3x8x32xbf16, #tpu.memory_space<vmem>>, %arg16: memref<8x32xbf16, #tpu.memory_space<vmem>>) attributes {dimension_semantics = [#tpu.dimension_semantics<parallel>], iteration_bounds = array<i64: 2>, scalar_prefetch = 0 : i64, scratch_operands = 2 : i64, tpu.core_type = #tpu.core_type<tc>, window_params = [{transform_indices = @transform_0, window_bounds = array<i64: 1, 8, 32>}, {pipeline_mode = #tpu.pipeline_mode<synchronous>, transform_indices = @transform_1, window_bounds = array<i64: 1, 32>}, {pipeline_mode = #tpu.pipeline_mode<synchronous>, transform_indices = @transform_2, window_bounds = array<i64: 1, 32>}, {pipeline_mode = #tpu.pipeline_mode<synchronous>, transform_indices = @transform_3, window_bounds = array<i64: 32, 96>}, {pipeline_mode = #tpu.pipeline_mode<synchronous>, transform_indices = @transform_4, window_bounds = array<i64: 1, 96>}, {pipeline_mode = #tpu.pipeline_mode<synchronous>, transform_indices = @transform_5, window_bounds = array<i64: 32, 32>}, {pipeline_mode = #tpu.pipeline_mode<synchronous>, transform_indices = @transform_6, window_bounds = array<i64: 1, 32>}, {pipeline_mode = #tpu.pipeline_mode<synchronous>, transform_indices = @transform_7, window_bounds = array<i64: 1, 32>}, {pipeline_mode = #tpu.pipeline_mode<synchronous>, transform_indices = @transform_8, window_bounds = array<i64: 1, 32>}, {pipeline_mode = #tpu.pipeline_mode<synchronous>, transform_indices = @transform_9, window_bounds = array<i64: 32, 64>}, {pipeline_mode = #tpu.pipeline_mode<synchronous>, transform_indices = @transform_10, window_bounds = array<i64: 1, 64>}, {pipeline_mode = #tpu.pipeline_mode<synchronous>, transform_indices = @transform_11, window_bounds = array<i64: 64, 32>}, {pipeline_mode = #tpu.pipeline_mode<synchronous>, transform_indices = @transform_12, window_bounds = array<i64: 1, 32>}, {transform_indices = @transform_13, window_bounds = array<i64: 1, 8, 32>}]} {
    %c0 = arith.constant 0 : index
    %c0_0 = arith.constant 0 : index
    %c0_1 = arith.constant 0 : index
    %0 = vector.load %arg1[%c0, %c0_0, %c0_1] : memref<1x8x32xf32, #tpu.memory_space<vmem>>, vector<1x8x32xf32>
    %1 = vector.shape_cast %0 : vector<1x8x32xf32> to vector<8x32xf32>
    %c0_2 = arith.constant 0 : index
    %c0_3 = arith.constant 0 : index
    %2 = vector.load %arg2[%c0_2, %c0_3] : memref<1x32xf32, #tpu.memory_space<vmem>>, vector<1x32xf32>
    %c0_4 = arith.constant 0 : index
    %c0_5 = arith.constant 0 : index
    %3 = vector.load %arg3[%c0_4, %c0_5] : memref<1x32xf32, #tpu.memory_space<vmem>>, vector<1x32xf32>
    %cst = arith.constant dense<0.000000e+00> : vector<8xf32>
    %4 = vector.multi_reduction <add>, %1, %cst [1] : vector<8x32xf32> to vector<8xf32>
    %5 = vector.shape_cast %4 : vector<8xf32> to vector<8x1xf32>
    %cst_6 = arith.constant 3.200000e+01 : f32
    %6 = vector.broadcast %cst_6 : f32 to vector<8x1xf32>
    %7 = arith.divf %5, %6 : vector<8x1xf32>
    %8 = vector.broadcast %7 : vector<8x1xf32> to vector<8x32xf32>
    %9 = arith.subf %1, %8 : vector<8x32xf32>
    %10 = arith.mulf %9, %9 : vector<8x32xf32>
    %cst_7 = arith.constant dense<0.000000e+00> : vector<8xf32>
    %11 = vector.multi_reduction <add>, %10, %cst_7 [1] : vector<8x32xf32> to vector<8xf32>
    %12 = vector.shape_cast %11 : vector<8xf32> to vector<8x1xf32>
    %cst_8 = arith.constant 3.200000e+01 : f32
    %13 = vector.broadcast %cst_8 : f32 to vector<8x1xf32>
    %14 = arith.divf %12, %13 : vector<8x1xf32>
    %15 = vector.broadcast %7 : vector<8x1xf32> to vector<8x32xf32>
    %16 = arith.subf %1, %15 : vector<8x32xf32>
    %cst_9 = arith.constant 9.99999974E-6 : f32
    %17 = vector.broadcast %cst_9 : f32 to vector<8x1xf32>
    %18 = arith.addf %14, %17 : vector<8x1xf32>
    %19 = math.rsqrt %18 : vector<8x1xf32>
    %20 = vector.broadcast %19 : vector<8x1xf32> to vector<8x32xf32>
    %21 = arith.mulf %16, %20 : vector<8x32xf32>
    %22 = vector.broadcast %2 : vector<1x32xf32> to vector<8x32xf32>
    %23 = arith.mulf %21, %22 : vector<8x32xf32>
    %24 = vector.broadcast %3 : vector<1x32xf32> to vector<8x32xf32>
    %25 = arith.addf %23, %24 : vector<8x32xf32>
    %26 = arith.truncf %25 : vector<8x32xf32> to vector<8x32xbf16>
    %c0_10 = arith.constant 0 : index
    %c0_11 = arith.constant 0 : index
    %27 = vector.load %arg4[%c0_10, %c0_11] : memref<32x96xbf16, #tpu.memory_space<vmem>>, vector<32x96xbf16>
    %cst_12 = arith.constant dense<0.000000e+00> : vector<8x96xf32>
    %28 = tpu.matmul %26, %27, %cst_12 {dimension_numbers = #tpu.dot_dimension_numbers<[1], [0], [0], [1], [0, 0, 1, 1], [], []>} : vector<8x32xbf16>, vector<32x96xbf16>, vector<8x96xf32> -> vector<8x96xf32>
    %c0_13 = arith.constant 0 : index
    %c0_14 = arith.constant 0 : index
    %29 = vector.load %arg5[%c0_13, %c0_14] : memref<1x96xf32, #tpu.memory_space<vmem>>, vector<1x96xf32>
    %30 = vector.broadcast %29 : vector<1x96xf32> to vector<8x96xf32>
    %31 = arith.addf %28, %30 : vector<8x96xf32>
    %32 = vector.extract_strided_slice %31 {offsets = [0, 0], sizes = [8, 32], strides = [1, 1]} : vector<8x96xf32> to vector<8x32xf32>
    %cst_15 = arith.constant 0.353553385 : f32
    %33 = vector.broadcast %cst_15 : f32 to vector<8x32xf32>
    %34 = arith.mulf %32, %33 : vector<8x32xf32>
    %35 = arith.truncf %34 : vector<8x32xf32> to vector<8x32xbf16>
    %c0_16 = arith.constant 0 : index
    %c0_17 = arith.constant 0 : index
    %c0_18 = arith.constant 0 : index
    %36 = vector.load %arg15[%c0_16, %c0_17, %c0_18] : memref<3x8x32xbf16, #tpu.memory_space<vmem>>, vector<1x8x32xbf16>
    %37 = vector.shape_cast %36 : vector<1x8x32xbf16> to vector<8x32xbf16>
    %38 = vector.shape_cast %35 : vector<8x32xbf16> to vector<1x8x32xbf16>
    tpu.vector_store %arg15[%c0_16, %c0_17, %c0_18], %38 {strides = array<i32>} : memref<3x8x32xbf16, #tpu.memory_space<vmem>>, vector<1x8x32xbf16>,
    %39 = vector.extract_strided_slice %31 {offsets = [0, 32], sizes = [8, 32], strides = [1, 1]} : vector<8x96xf32> to vector<8x32xf32>
    %40 = arith.truncf %39 : vector<8x32xf32> to vector<8x32xbf16>
    %c1 = arith.constant 1 : index
    %c0_19 = arith.constant 0 : index
    %c0_20 = arith.constant 0 : index
    %41 = vector.load %arg15[%c1, %c0_19, %c0_20] : memref<3x8x32xbf16, #tpu.memory_space<vmem>>, vector<1x8x32xbf16>
    %42 = vector.shape_cast %41 : vector<1x8x32xbf16> to vector<8x32xbf16>
    %43 = vector.shape_cast %40 : vector<8x32xbf16> to vector<1x8x32xbf16>
    tpu.vector_store %arg15[%c1, %c0_19, %c0_20], %43 {strides = array<i32>} : memref<3x8x32xbf16, #tpu.memory_space<vmem>>, vector<1x8x32xbf16>,
    %44 = vector.extract_strided_slice %31 {offsets = [0, 64], sizes = [8, 32], strides = [1, 1]} : vector<8x96xf32> to vector<8x32xf32>
    %45 = arith.truncf %44 : vector<8x32xf32> to vector<8x32xbf16>
    %c2 = arith.constant 2 : index
    %c0_21 = arith.constant 0 : index
    %c0_22 = arith.constant 0 : index
    %46 = vector.load %arg15[%c2, %c0_21, %c0_22] : memref<3x8x32xbf16, #tpu.memory_space<vmem>>, vector<1x8x32xbf16>
    %47 = vector.shape_cast %46 : vector<1x8x32xbf16> to vector<8x32xbf16>
    %48 = vector.shape_cast %45 : vector<8x32xbf16> to vector<1x8x32xbf16>
    tpu.vector_store %arg15[%c2, %c0_21, %c0_22], %48 {strides = array<i32>} : memref<3x8x32xbf16, #tpu.memory_space<vmem>>, vector<1x8x32xbf16>,
    %c0_23 = arith.constant 0 : index
    %c0_24 = arith.constant 0 : index
    %c0_25 = arith.constant 0 : index
    %49 = vector.load %arg15[%c0_23, %c0_24, %c0_25] : memref<3x8x32xbf16, #tpu.memory_space<vmem>>, vector<1x8x8xbf16>
    %50 = vector.shape_cast %49 : vector<1x8x8xbf16> to vector<8x8xbf16>
    %c1_26 = arith.constant 1 : index
    %c0_27 = arith.constant 0 : index
    %c0_28 = arith.constant 0 : index
    %51 = vector.load %arg15[%c1_26, %c0_27, %c0_28] : memref<3x8x32xbf16, #tpu.memory_space<vmem>>, vector<1x8x8xbf16>
    %52 = vector.shape_cast %51 : vector<1x8x8xbf16> to vector<8x8xbf16>
    %c2_29 = arith.constant 2 : index
    %c0_30 = arith.constant 0 : index
    %c0_31 = arith.constant 0 : index
    %53 = vector.load %arg15[%c2_29, %c0_30, %c0_31] : memref<3x8x32xbf16, #tpu.memory_space<vmem>>, vector<1x8x8xbf16>
    %54 = vector.shape_cast %53 : vector<1x8x8xbf16> to vector<8x8xbf16>
    %cst_32 = arith.constant dense<0.000000e+00> : vector<8x8xf32>
    %55 = tpu.matmul %50, %52, %cst_32 {dimension_numbers = #tpu.dot_dimension_numbers<[1], [1], [0], [0], [0, 0, 1, 0], [], []>} : vector<8x8xbf16>, vector<8x8xbf16>, vector<8x8xf32> -> vector<8x8xf32>
    %cst_33 = arith.constant dense<0xFF800000> : vector<8xf32>
    %56 = vector.multi_reduction <maximumf>, %55, %cst_33 [1] : vector<8x8xf32> to vector<8xf32>
    %57 = vector.shape_cast %56 : vector<8xf32> to vector<8x1xf32>
    %58 = vector.broadcast %57 : vector<8x1xf32> to vector<8x8xf32>
    %59 = arith.subf %55, %58 : vector<8x8xf32>
    %60 = math.exp %59 : vector<8x8xf32>
    %cst_34 = arith.constant dense<0.000000e+00> : vector<8xf32>
    %61 = vector.multi_reduction <add>, %60, %cst_34 [1] : vector<8x8xf32> to vector<8xf32>
    %62 = vector.shape_cast %61 : vector<8xf32> to vector<8x1xf32>
    %63 = tpu.reciprocal %62 {approx = true} : vector<8x1xf32> -> vector<8x1xf32>
    %64 = vector.broadcast %63 : vector<8x1xf32> to vector<8x8xf32>
    %65 = arith.mulf %60, %64 : vector<8x8xf32>
    %66 = arith.truncf %65 : vector<8x8xf32> to vector<8x8xbf16>
    %cst_35 = arith.constant dense<0.000000e+00> : vector<8x8xf32>
    %67 = tpu.matmul %66, %54, %cst_35 {dimension_numbers = #tpu.dot_dimension_numbers<[1], [0], [0], [1], [0, 0, 1, 1], [], []>} : vector<8x8xbf16>, vector<8x8xbf16>, vector<8x8xf32> -> vector<8x8xf32>
    %68 = arith.truncf %67 : vector<8x8xf32> to vector<8x8xbf16>
    %c0_36 = arith.constant 0 : index
    %c0_37 = arith.constant 0 : index
    %69 = vector.load %arg16[%c0_36, %c0_37] : memref<8x32xbf16, #tpu.memory_space<vmem>>, vector<8x8xbf16>
    tpu.vector_store %arg16[%c0_36, %c0_37], %68 {strides = array<i32>} : memref<8x32xbf16, #tpu.memory_space<vmem>>, vector<8x8xbf16>,
    %c0_38 = arith.constant 0 : index
    %c0_39 = arith.constant 0 : index
    %c8 = arith.constant 8 : index
    %70 = vector.load %arg15[%c0_38, %c0_39, %c8] : memref<3x8x32xbf16, #tpu.memory_space<vmem>>, vector<1x8x8xbf16>
    %71 = vector.shape_cast %70 : vector<1x8x8xbf16> to vector<8x8xbf16>
    %c1_40 = arith.constant 1 : index
    %c0_41 = arith.constant 0 : index
    %c8_42 = arith.constant 8 : index
    %72 = vector.load %arg15[%c1_40, %c0_41, %c8_42] : memref<3x8x32xbf16, #tpu.memory_space<vmem>>, vector<1x8x8xbf16>
    %73 = vector.shape_cast %72 : vector<1x8x8xbf16> to vector<8x8xbf16>
    %c2_43 = arith.constant 2 : index
    %c0_44 = arith.constant 0 : index
    %c8_45 = arith.constant 8 : index
    %74 = vector.load %arg15[%c2_43, %c0_44, %c8_45] : memref<3x8x32xbf16, #tpu.memory_space<vmem>>, vector<1x8x8xbf16>
    %75 = vector.shape_cast %74 : vector<1x8x8xbf16> to vector<8x8xbf16>
    %cst_46 = arith.constant dense<0.000000e+00> : vector<8x8xf32>
    %76 = tpu.matmul %71, %73, %cst_46 {dimension_numbers = #tpu.dot_dimension_numbers<[1], [1], [0], [0], [0, 0, 1, 0], [], []>} : vector<8x8xbf16>, vector<8x8xbf16>, vector<8x8xf32> -> vector<8x8xf32>
    %cst_47 = arith.constant dense<0xFF800000> : vector<8xf32>
    %77 = vector.multi_reduction <maximumf>, %76, %cst_47 [1] : vector<8x8xf32> to vector<8xf32>
    %78 = vector.shape_cast %77 : vector<8xf32> to vector<8x1xf32>
    %79 = vector.broadcast %78 : vector<8x1xf32> to vector<8x8xf32>
    %80 = arith.subf %76, %79 : vector<8x8xf32>
    %81 = math.exp %80 : vector<8x8xf32>
    %cst_48 = arith.constant dense<0.000000e+00> : vector<8xf32>
    %82 = vector.multi_reduction <add>, %81, %cst_48 [1] : vector<8x8xf32> to vector<8xf32>
    %83 = vector.shape_cast %82 : vector<8xf32> to vector<8x1xf32>
    %84 = tpu.reciprocal %83 {approx = true} : vector<8x1xf32> -> vector<8x1xf32>
    %85 = vector.broadcast %84 : vector<8x1xf32> to vector<8x8xf32>
    %86 = arith.mulf %81, %85 : vector<8x8xf32>
    %87 = arith.truncf %86 : vector<8x8xf32> to vector<8x8xbf16>
    %cst_49 = arith.constant dense<0.000000e+00> : vector<8x8xf32>
    %88 = tpu.matmul %87, %75, %cst_49 {dimension_numbers = #tpu.dot_dimension_numbers<[1], [0], [0], [1], [0, 0, 1, 1], [], []>} : vector<8x8xbf16>, vector<8x8xbf16>, vector<8x8xf32> -> vector<8x8xf32>
    %89 = arith.truncf %88 : vector<8x8xf32> to vector<8x8xbf16>
    %c0_50 = arith.constant 0 : index
    %c8_51 = arith.constant 8 : index
    %90 = vector.load %arg16[%c0_50, %c8_51] : memref<8x32xbf16, #tpu.memory_space<vmem>>, vector<8x8xbf16>
    tpu.vector_store %arg16[%c0_50, %c8_51], %89 {strides = array<i32>} : memref<8x32xbf16, #tpu.memory_space<vmem>>, vector<8x8xbf16>,
    %c0_52 = arith.constant 0 : index
    %c0_53 = arith.constant 0 : index
    %c16 = arith.constant 16 : index
    %91 = vector.load %arg15[%c0_52, %c0_53, %c16] : memref<3x8x32xbf16, #tpu.memory_space<vmem>>, vector<1x8x8xbf16>
    %92 = vector.shape_cast %91 : vector<1x8x8xbf16> to vector<8x8xbf16>
    %c1_54 = arith.constant 1 : index
    %c0_55 = arith.constant 0 : index
    %c16_56 = arith.constant 16 : index
    %93 = vector.load %arg15[%c1_54, %c0_55, %c16_56] : memref<3x8x32xbf16, #tpu.memory_space<vmem>>, vector<1x8x8xbf16>
    %94 = vector.shape_cast %93 : vector<1x8x8xbf16> to vector<8x8xbf16>
    %c2_57 = arith.constant 2 : index
    %c0_58 = arith.constant 0 : index
    %c16_59 = arith.constant 16 : index
    %95 = vector.load %arg15[%c2_57, %c0_58, %c16_59] : memref<3x8x32xbf16, #tpu.memory_space<vmem>>, vector<1x8x8xbf16>
    %96 = vector.shape_cast %95 : vector<1x8x8xbf16> to vector<8x8xbf16>
    %cst_60 = arith.constant dense<0.000000e+00> : vector<8x8xf32>
    %97 = tpu.matmul %92, %94, %cst_60 {dimension_numbers = #tpu.dot_dimension_numbers<[1], [1], [0], [0], [0, 0, 1, 0], [], []>} : vector<8x8xbf16>, vector<8x8xbf16>, vector<8x8xf32> -> vector<8x8xf32>
    %cst_61 = arith.constant dense<0xFF800000> : vector<8xf32>
    %98 = vector.multi_reduction <maximumf>, %97, %cst_61 [1] : vector<8x8xf32> to vector<8xf32>
    %99 = vector.shape_cast %98 : vector<8xf32> to vector<8x1xf32>
    %100 = vector.broadcast %99 : vector<8x1xf32> to vector<8x8xf32>
    %101 = arith.subf %97, %100 : vector<8x8xf32>
    %102 = math.exp %101 : vector<8x8xf32>
    %cst_62 = arith.constant dense<0.000000e+00> : vector<8xf32>
    %103 = vector.multi_reduction <add>, %102, %cst_62 [1] : vector<8x8xf32> to vector<8xf32>
    %104 = vector.shape_cast %103 : vector<8xf32> to vector<8x1xf32>
    %105 = tpu.reciprocal %104 {approx = true} : vector<8x1xf32> -> vector<8x1xf32>
    %106 = vector.broadcast %105 : vector<8x1xf32> to vector<8x8xf32>
    %107 = arith.mulf %102, %106 : vector<8x8xf32>
    %108 = arith.truncf %107 : vector<8x8xf32> to vector<8x8xbf16>
    %cst_63 = arith.constant dense<0.000000e+00> : vector<8x8xf32>
    %109 = tpu.matmul %108, %96, %cst_63 {dimension_numbers = #tpu.dot_dimension_numbers<[1], [0], [0], [1], [0, 0, 1, 1], [], []>} : vector<8x8xbf16>, vector<8x8xbf16>, vector<8x8xf32> -> vector<8x8xf32>
    %110 = arith.truncf %109 : vector<8x8xf32> to vector<8x8xbf16>
    %c0_64 = arith.constant 0 : index
    %c16_65 = arith.constant 16 : index
    %111 = vector.load %arg16[%c0_64, %c16_65] : memref<8x32xbf16, #tpu.memory_space<vmem>>, vector<8x8xbf16>
    tpu.vector_store %arg16[%c0_64, %c16_65], %110 {strides = array<i32>} : memref<8x32xbf16, #tpu.memory_space<vmem>>, vector<8x8xbf16>,
    %c0_66 = arith.constant 0 : index
    %c0_67 = arith.constant 0 : index
    %c24 = arith.constant 24 : index
    %112 = vector.load %arg15[%c0_66, %c0_67, %c24] : memref<3x8x32xbf16, #tpu.memory_space<vmem>>, vector<1x8x8xbf16>
    %113 = vector.shape_cast %112 : vector<1x8x8xbf16> to vector<8x8xbf16>
    %c1_68 = arith.constant 1 : index
    %c0_69 = arith.constant 0 : index
    %c24_70 = arith.constant 24 : index
    %114 = vector.load %arg15[%c1_68, %c0_69, %c24_70] : memref<3x8x32xbf16, #tpu.memory_space<vmem>>, vector<1x8x8xbf16>
    %115 = vector.shape_cast %114 : vector<1x8x8xbf16> to vector<8x8xbf16>
    %c2_71 = arith.constant 2 : index
    %c0_72 = arith.constant 0 : index
    %c24_73 = arith.constant 24 : index
    %116 = vector.load %arg15[%c2_71, %c0_72, %c24_73] : memref<3x8x32xbf16, #tpu.memory_space<vmem>>, vector<1x8x8xbf16>
    %117 = vector.shape_cast %116 : vector<1x8x8xbf16> to vector<8x8xbf16>
    %cst_74 = arith.constant dense<0.000000e+00> : vector<8x8xf32>
    %118 = tpu.matmul %113, %115, %cst_74 {dimension_numbers = #tpu.dot_dimension_numbers<[1], [1], [0], [0], [0, 0, 1, 0], [], []>} : vector<8x8xbf16>, vector<8x8xbf16>, vector<8x8xf32> -> vector<8x8xf32>
    %cst_75 = arith.constant dense<0xFF800000> : vector<8xf32>
    %119 = vector.multi_reduction <maximumf>, %118, %cst_75 [1] : vector<8x8xf32> to vector<8xf32>
    %120 = vector.shape_cast %119 : vector<8xf32> to vector<8x1xf32>
    %121 = vector.broadcast %120 : vector<8x1xf32> to vector<8x8xf32>
    %122 = arith.subf %118, %121 : vector<8x8xf32>
    %123 = math.exp %122 : vector<8x8xf32>
    %cst_76 = arith.constant dense<0.000000e+00> : vector<8xf32>
    %124 = vector.multi_reduction <add>, %123, %cst_76 [1] : vector<8x8xf32> to vector<8xf32>
    %125 = vector.shape_cast %124 : vector<8xf32> to vector<8x1xf32>
    %126 = tpu.reciprocal %125 {approx = true} : vector<8x1xf32> -> vector<8x1xf32>
    %127 = vector.broadcast %126 : vector<8x1xf32> to vector<8x8xf32>
    %128 = arith.mulf %123, %127 : vector<8x8xf32>
    %129 = arith.truncf %128 : vector<8x8xf32> to vector<8x8xbf16>
    %cst_77 = arith.constant dense<0.000000e+00> : vector<8x8xf32>
    %130 = tpu.matmul %129, %117, %cst_77 {dimension_numbers = #tpu.dot_dimension_numbers<[1], [0], [0], [1], [0, 0, 1, 1], [], []>} : vector<8x8xbf16>, vector<8x8xbf16>, vector<8x8xf32> -> vector<8x8xf32>
    %131 = arith.truncf %130 : vector<8x8xf32> to vector<8x8xbf16>
    %c0_78 = arith.constant 0 : index
    %c24_79 = arith.constant 24 : index
    %132 = vector.load %arg16[%c0_78, %c24_79] : memref<8x32xbf16, #tpu.memory_space<vmem>>, vector<8x8xbf16>
    tpu.vector_store %arg16[%c0_78, %c24_79], %131 {strides = array<i32>} : memref<8x32xbf16, #tpu.memory_space<vmem>>, vector<8x8xbf16>,
    %c0_80 = arith.constant 0 : index
    %c0_81 = arith.constant 0 : index
    %133 = vector.load %arg16[%c0_80, %c0_81] : memref<8x32xbf16, #tpu.memory_space<vmem>>, vector<8x32xbf16>
    %c0_82 = arith.constant 0 : index
    %c0_83 = arith.constant 0 : index
    %134 = vector.load %arg6[%c0_82, %c0_83] : memref<32x32xbf16, #tpu.memory_space<vmem>>, vector<32x32xbf16>
    %cst_84 = arith.constant dense<0.000000e+00> : vector<8x32xf32>
    %135 = tpu.matmul %133, %134, %cst_84 {dimension_numbers = #tpu.dot_dimension_numbers<[1], [0], [0], [1], [0, 0, 1, 1], [], []>} : vector<8x32xbf16>, vector<32x32xbf16>, vector<8x32xf32> -> vector<8x32xf32>
    %c0_85 = arith.constant 0 : index
    %c0_86 = arith.constant 0 : index
    %136 = vector.load %arg7[%c0_85, %c0_86] : memref<1x32xf32, #tpu.memory_space<vmem>>, vector<1x32xf32>
    %137 = vector.broadcast %136 : vector<1x32xf32> to vector<8x32xf32>
    %138 = arith.addf %135, %137 : vector<8x32xf32>
    %139 = arith.addf %1, %138 : vector<8x32xf32>
    %c0_87 = arith.constant 0 : index
    %c0_88 = arith.constant 0 : index
    %140 = vector.load %arg8[%c0_87, %c0_88] : memref<1x32xf32, #tpu.memory_space<vmem>>, vector<1x32xf32>
    %c0_89 = arith.constant 0 : index
    %c0_90 = arith.constant 0 : index
    %141 = vector.load %arg9[%c0_89, %c0_90] : memref<1x32xf32, #tpu.memory_space<vmem>>, vector<1x32xf32>
    %cst_91 = arith.constant dense<0.000000e+00> : vector<8xf32>
    %142 = vector.multi_reduction <add>, %139, %cst_91 [1] : vector<8x32xf32> to vector<8xf32>
    %143 = vector.shape_cast %142 : vector<8xf32> to vector<8x1xf32>
    %cst_92 = arith.constant 3.200000e+01 : f32
    %144 = vector.broadcast %cst_92 : f32 to vector<8x1xf32>
    %145 = arith.divf %143, %144 : vector<8x1xf32>
    %146 = vector.broadcast %145 : vector<8x1xf32> to vector<8x32xf32>
    %147 = arith.subf %139, %146 : vector<8x32xf32>
    %148 = arith.mulf %147, %147 : vector<8x32xf32>
    %cst_93 = arith.constant dense<0.000000e+00> : vector<8xf32>
    %149 = vector.multi_reduction <add>, %148, %cst_93 [1] : vector<8x32xf32> to vector<8xf32>
    %150 = vector.shape_cast %149 : vector<8xf32> to vector<8x1xf32>
    %cst_94 = arith.constant 3.200000e+01 : f32
    %151 = vector.broadcast %cst_94 : f32 to vector<8x1xf32>
    %152 = arith.divf %150, %151 : vector<8x1xf32>
    %153 = vector.broadcast %145 : vector<8x1xf32> to vector<8x32xf32>
    %154 = arith.subf %139, %153 : vector<8x32xf32>
    %cst_95 = arith.constant 9.99999974E-6 : f32
    %155 = vector.broadcast %cst_95 : f32 to vector<8x1xf32>
    %156 = arith.addf %152, %155 : vector<8x1xf32>
    %157 = math.rsqrt %156 : vector<8x1xf32>
    %158 = vector.broadcast %157 : vector<8x1xf32> to vector<8x32xf32>
    %159 = arith.mulf %154, %158 : vector<8x32xf32>
    %160 = vector.broadcast %140 : vector<1x32xf32> to vector<8x32xf32>
    %161 = arith.mulf %159, %160 : vector<8x32xf32>
    %162 = vector.broadcast %141 : vector<1x32xf32> to vector<8x32xf32>
    %163 = arith.addf %161, %162 : vector<8x32xf32>
    %164 = arith.truncf %163 : vector<8x32xf32> to vector<8x32xbf16>
    %c0_96 = arith.constant 0 : index
    %c0_97 = arith.constant 0 : index
    %165 = vector.load %arg10[%c0_96, %c0_97] : memref<32x64xbf16, #tpu.memory_space<vmem>>, vector<32x64xbf16>
    %cst_98 = arith.constant dense<0.000000e+00> : vector<8x64xf32>
    %166 = tpu.matmul %164, %165, %cst_98 {dimension_numbers = #tpu.dot_dimension_numbers<[1], [0], [0], [1], [0, 0, 1, 1], [], []>} : vector<8x32xbf16>, vector<32x64xbf16>, vector<8x64xf32> -> vector<8x64xf32>
    %c0_99 = arith.constant 0 : index
    %c0_100 = arith.constant 0 : index
    %167 = vector.load %arg11[%c0_99, %c0_100] : memref<1x64xf32, #tpu.memory_space<vmem>>, vector<1x64xf32>
    %168 = vector.broadcast %167 : vector<1x64xf32> to vector<8x64xf32>
    %169 = arith.addf %166, %168 : vector<8x64xf32>
    %cst_101 = arith.constant 5.000000e-01 : f32
    %170 = vector.broadcast %cst_101 : f32 to vector<8x64xf32>
    %171 = arith.mulf %170, %169 : vector<8x64xf32>
    %cst_102 = arith.constant 0.707106769 : f32
    %172 = vector.broadcast %cst_102 : f32 to vector<8x64xf32>
    %173 = arith.mulf %169, %172 : vector<8x64xf32>
    %174 = math.erf %173 : vector<8x64xf32>
    %cst_103 = arith.constant 1.000000e+00 : f32
    %175 = vector.broadcast %cst_103 : f32 to vector<8x64xf32>
    %176 = arith.addf %175, %174 : vector<8x64xf32>
    %177 = arith.mulf %171, %176 : vector<8x64xf32>
    %178 = arith.truncf %177 : vector<8x64xf32> to vector<8x64xbf16>
    %c0_104 = arith.constant 0 : index
    %c0_105 = arith.constant 0 : index
    %179 = vector.load %arg12[%c0_104, %c0_105] : memref<64x32xbf16, #tpu.memory_space<vmem>>, vector<64x32xbf16>
    %cst_106 = arith.constant dense<0.000000e+00> : vector<8x32xf32>
    %180 = tpu.matmul %178, %179, %cst_106 {dimension_numbers = #tpu.dot_dimension_numbers<[1], [0], [0], [1], [0, 0, 1, 1], [], []>} : vector<8x64xbf16>, vector<64x32xbf16>, vector<8x32xf32> -> vector<8x32xf32>
    %c0_107 = arith.constant 0 : index
    %c0_108 = arith.constant 0 : index
    %181 = vector.load %arg13[%c0_107, %c0_108] : memref<1x32xf32, #tpu.memory_space<vmem>>, vector<1x32xf32>
    %182 = vector.broadcast %181 : vector<1x32xf32> to vector<8x32xf32>
    %183 = arith.addf %180, %182 : vector<8x32xf32>
    %184 = arith.addf %139, %183 : vector<8x32xf32>
    %c0_109 = arith.constant 0 : index
    %c0_110 = arith.constant 0 : index
    %c0_111 = arith.constant 0 : index
    %185 = vector.load %arg14[%c0_109, %c0_110, %c0_111] : memref<1x8x32xf32, #tpu.memory_space<vmem>>, vector<1x8x32xf32>
    %186 = vector.shape_cast %185 : vector<1x8x32xf32> to vector<8x32xf32>
    %187 = vector.shape_cast %184 : vector<8x32xf32> to vector<1x8x32xf32>
    tpu.vector_store %arg14[%c0_109, %c0_110, %c0_111], %187 {strides = array<i32>} : memref<1x8x32xf32, #tpu.memory_space<vmem>>, vector<1x8x32xf32>,
    return
  }
  func.func @transform_0(%arg0: i32) -> (i32, i32, i32) {
    %c0_i32 = arith.constant 0 : i32
    %c0_i32_0 = arith.constant 0 : i32
    %c0_i32_1 = arith.constant 0 : i32
    return %arg0, %c0_i32, %c0_i32_0 : i32, i32, i32
  }
  func.func @transform_1(%arg0: i32) -> (i32, i32) {
    %c0_i32 = arith.constant 0 : i32
    %c0_i32_0 = arith.constant 0 : i32
    %c0_i32_1 = arith.constant 0 : i32
    return %c0_i32, %c0_i32_0 : i32, i32
  }
  func.func @transform_2(%arg0: i32) -> (i32, i32) {
    %c0_i32 = arith.constant 0 : i32
    %c0_i32_0 = arith.constant 0 : i32
    %c0_i32_1 = arith.constant 0 : i32
    return %c0_i32, %c0_i32_0 : i32, i32
  }
  func.func @transform_3(%arg0: i32) -> (i32, i32) {
    %c0_i32 = arith.constant 0 : i32
    %c0_i32_0 = arith.constant 0 : i32
    %c0_i32_1 = arith.constant 0 : i32
    return %c0_i32, %c0_i32_0 : i32, i32
  }
  func.func @transform_4(%arg0: i32) -> (i32, i32) {
    %c0_i32 = arith.constant 0 : i32
    %c0_i32_0 = arith.constant 0 : i32
    %c0_i32_1 = arith.constant 0 : i32
    return %c0_i32, %c0_i32_0 : i32, i32
  }
  func.func @transform_5(%arg0: i32) -> (i32, i32) {
    %c0_i32 = arith.constant 0 : i32
    %c0_i32_0 = arith.constant 0 : i32
    %c0_i32_1 = arith.constant 0 : i32
    return %c0_i32, %c0_i32_0 : i32, i32
  }
  func.func @transform_6(%arg0: i32) -> (i32, i32) {
    %c0_i32 = arith.constant 0 : i32
    %c0_i32_0 = arith.constant 0 : i32
    %c0_i32_1 = arith.constant 0 : i32
    return %c0_i32, %c0_i32_0 : i32, i32
  }
  func.func @transform_7(%arg0: i32) -> (i32, i32) {
    %c0_i32 = arith.constant 0 : i32
    %c0_i32_0 = arith.constant 0 : i32
    %c0_i32_1 = arith.constant 0 : i32
    return %c0_i32, %c0_i32_0 : i32, i32
  }
  func.func @transform_8(%arg0: i32) -> (i32, i32) {
    %c0_i32 = arith.constant 0 : i32
    %c0_i32_0 = arith.constant 0 : i32
    %c0_i32_1 = arith.constant 0 : i32
    return %c0_i32, %c0_i32_0 : i32, i32
  }
  func.func @transform_9(%arg0: i32) -> (i32, i32) {
    %c0_i32 = arith.constant 0 : i32
    %c0_i32_0 = arith.constant 0 : i32
    %c0_i32_1 = arith.constant 0 : i32
    return %c0_i32, %c0_i32_0 : i32, i32
  }
  func.func @transform_10(%arg0: i32) -> (i32, i32) {
    %c0_i32 = arith.constant 0 : i32
    %c0_i32_0 = arith.constant 0 : i32
    %c0_i32_1 = arith.constant 0 : i32
    return %c0_i32, %c0_i32_0 : i32, i32
  }
  func.func @transform_11(%arg0: i32) -> (i32, i32) {
    %c0_i32 = arith.constant 0 : i32
    %c0_i32_0 = arith.constant 0 : i32
    %c0_i32_1 = arith.constant 0 : i32
    return %c0_i32, %c0_i32_0 : i32, i32
  }
  func.func @transform_12(%arg0: i32) -> (i32, i32) {
    %c0_i32 = arith.constant 0 : i32
    %c0_i32_0 = arith.constant 0 : i32
    %c0_i32_1 = arith.constant 0 : i32
    return %c0_i32, %c0_i32_0 : i32, i32
  }
  func.func @transform_13(%arg0: i32) -> (i32, i32, i32) {
    %c0_i32 = arith.constant 0 : i32
    %c0_i32_0 = arith.constant 0 : i32
    %c0_i32_1 = arith.constant 0 : i32
    return %arg0, %c0_i32, %c0_i32_0 : i32, i32, i32
  }
}

module attributes {stable_mosaic.version = 11 : i64} {
  func.func @block_kernel(%arg0: i32, %arg1: memref<1x8x32xf32, #tpu.memory_space<vmem>>, %arg2: memref<1x32xf32, #tpu.memory_space<vmem>>, %arg3: memref<1x32xf32, #tpu.memory_space<vmem>>, %arg4: memref<32x96xbf16, #tpu.memory_space<vmem>>, %arg5: memref<1x96xf32, #tpu.memory_space<vmem>>, %arg6: memref<32x32xbf16, #tpu.memory_space<vmem>>, %arg7: memref<1x32xf32, #tpu.memory_space<vmem>>, %arg8: memref<1x32xf32, #tpu.memory_space<vmem>>, %arg9: memref<1x32xf32, #tpu.memory_space<vmem>>, %arg10: memref<32x64xbf16, #tpu.memory_space<vmem>>, %arg11: memref<1x64xf32, #tpu.memory_space<vmem>>, %arg12: memref<64x32xbf16, #tpu.memory_space<vmem>>, %arg13: memref<1x32xf32, #tpu.memory_space<vmem>>, %arg14: memref<1x8x32xf32, #tpu.memory_space<vmem>>, %arg15: memref<3x8x32xbf16, #tpu.memory_space<vmem>>, %arg16: memref<8x32xbf16, #tpu.memory_space<vmem>>) attributes {dimension_semantics = [#tpu.dimension_semantics<parallel>], iteration_bounds = array<i64: 2>, scalar_prefetch = 0 : i64, scratch_operands = 2 : i64, tpu.core_type = #tpu.core_type<tc>, window_params = [{transform_indices = @transform_0, window_bounds = array<i64: 1, 8, 32>}, {pipeline_mode = #tpu.pipeline_mode<synchronous>, transform_indices = @transform_1, window_bounds = array<i64: 1, 32>}, {pipeline_mode = #tpu.pipeline_mode<synchronous>, transform_indices = @transform_2, window_bounds = array<i64: 1, 32>}, {pipeline_mode = #tpu.pipeline_mode<synchronous>, transform_indices = @transform_3, window_bounds = array<i64: 32, 96>}, {pipeline_mode = #tpu.pipeline_mode<synchronous>, transform_indices = @transform_4, window_bounds = array<i64: 1, 96>}, {pipeline_mode = #tpu.pipeline_mode<synchronous>, transform_indices = @transform_5, window_bounds = array<i64: 32, 32>}, {pipeline_mode = #tpu.pipeline_mode<synchronous>, transform_indices = @transform_6, window_bounds = array<i64: 1, 32>}, {pipeline_mode = #tpu.pipeline_mode<synchronous>, transform_indices = @transform_7, window_bounds = array<i64: 1, 32>}, {pipeline_mode = #tpu.pipeline_mode<synchronous>, transform_indices = @transform_8, window_bounds = array<i64: 1, 32>}, {pipeline_mode = #tpu.pipeline_mode<synchronous>, transform_indices = @transform_9, window_bounds = array<i64: 32, 64>}, {pipeline_mode = #tpu.pipeline_mode<synchronous>, transform_indices = @transform_10, window_bounds = array<i64: 1, 64>}, {pipeline_mode = #tpu.pipeline_mode<synchronous>, transform_indices = @transform_11, window_bounds = array<i64: 64, 32>}, {pipeline_mode = #tpu.pipeline_mode<synchronous>, transform_indices = @transform_12, window_bounds = array<i64: 1, 32>}, {transform_indices = @transform_13, window_bounds = array<i64: 1, 8, 32>}]} {
    %c0 = arith.constant 0 : index
    %c0_0 = arith.constant 0 : index
    %c0_1 = arith.constant 0 : index
    %0 = vector.load %arg1[%c0, %c0_0, %c0_1] : memref<1x8x32xf32, #tpu.memory_space<vmem>>, vector<1x8x32xf32>
    %1 = vector.shape_cast %0 : vector<1x8x32xf32> to vector<8x32xf32>
    %c0_2 = arith.constant 0 : index
    %c0_3 = arith.constant 0 : index
    %2 = vector.load %arg2[%c0_2, %c0_3] : memref<1x32xf32, #tpu.memory_space<vmem>>, vector<1x32xf32>
    %c0_4 = arith.constant 0 : index
    %c0_5 = arith.constant 0 : index
    %3 = vector.load %arg3[%c0_4, %c0_5] : memref<1x32xf32, #tpu.memory_space<vmem>>, vector<1x32xf32>
    %cst = arith.constant dense<0.000000e+00> : vector<8xf32>
    %4 = vector.multi_reduction <add>, %1, %cst [1] : vector<8x32xf32> to vector<8xf32>
    %5 = vector.shape_cast %4 : vector<8xf32> to vector<8x1xf32>
    %cst_6 = arith.constant 3.200000e+01 : f32
    %6 = vector.broadcast %cst_6 : f32 to vector<8x1xf32>
    %7 = arith.divf %5, %6 : vector<8x1xf32>
    %8 = vector.broadcast %7 : vector<8x1xf32> to vector<8x32xf32>
    %9 = arith.subf %1, %8 : vector<8x32xf32>
    %10 = arith.mulf %9, %9 : vector<8x32xf32>
    %cst_7 = arith.constant dense<0.000000e+00> : vector<8xf32>
    %11 = vector.multi_reduction <add>, %10, %cst_7 [1] : vector<8x32xf32> to vector<8xf32>
    %12 = vector.shape_cast %11 : vector<8xf32> to vector<8x1xf32>
    %cst_8 = arith.constant 3.200000e+01 : f32
    %13 = vector.broadcast %cst_8 : f32 to vector<8x1xf32>
    %14 = arith.divf %12, %13 : vector<8x1xf32>
    %15 = vector.broadcast %7 : vector<8x1xf32> to vector<8x32xf32>
    %16 = arith.subf %1, %15 : vector<8x32xf32>
    %cst_9 = arith.constant 9.99999974E-6 : f32
    %17 = vector.broadcast %cst_9 : f32 to vector<8x1xf32>
    %18 = arith.addf %14, %17 : vector<8x1xf32>
    %19 = math.rsqrt %18 : vector<8x1xf32>
    %20 = vector.broadcast %19 : vector<8x1xf32> to vector<8x32xf32>
    %21 = arith.mulf %16, %20 : vector<8x32xf32>
    %22 = vector.broadcast %2 : vector<1x32xf32> to vector<8x32xf32>
    %23 = arith.mulf %21, %22 : vector<8x32xf32>
    %24 = vector.broadcast %3 : vector<1x32xf32> to vector<8x32xf32>
    %25 = arith.addf %23, %24 : vector<8x32xf32>
    %26 = arith.truncf %25 : vector<8x32xf32> to vector<8x32xbf16>
    %c0_10 = arith.constant 0 : index
    %c0_11 = arith.constant 0 : index
    %27 = vector.load %arg4[%c0_10, %c0_11] : memref<32x96xbf16, #tpu.memory_space<vmem>>, vector<32x96xbf16>
    %cst_12 = arith.constant dense<0.000000e+00> : vector<8x96xf32>
    %28 = tpu.matmul %26, %27, %cst_12 {dimension_numbers = #tpu.dot_dimension_numbers<[1], [0], [0], [1], [0, 0, 1, 1], [], []>} : vector<8x32xbf16>, vector<32x96xbf16>, vector<8x96xf32> -> vector<8x96xf32>
    %c0_13 = arith.constant 0 : index
    %c0_14 = arith.constant 0 : index
    %29 = vector.load %arg5[%c0_13, %c0_14] : memref<1x96xf32, #tpu.memory_space<vmem>>, vector<1x96xf32>
    %30 = vector.broadcast %29 : vector<1x96xf32> to vector<8x96xf32>
    %31 = arith.addf %28, %30 : vector<8x96xf32>
    %32 = vector.extract_strided_slice %31 {offsets = [0, 0], sizes = [8, 32], strides = [1, 1]} : vector<8x96xf32> to vector<8x32xf32>
    %cst_15 = arith.constant 0.353553385 : f32
    %33 = vector.broadcast %cst_15 : f32 to vector<8x32xf32>
    %34 = arith.mulf %32, %33 : vector<8x32xf32>
    %35 = arith.truncf %34 : vector<8x32xf32> to vector<8x32xbf16>
    %c0_16 = arith.constant 0 : index
    %c0_17 = arith.constant 0 : index
    %c0_18 = arith.constant 0 : index
    %36 = vector.load %arg15[%c0_16, %c0_17, %c0_18] : memref<3x8x32xbf16, #tpu.memory_space<vmem>>, vector<1x8x32xbf16>
    %37 = vector.shape_cast %36 : vector<1x8x32xbf16> to vector<8x32xbf16>
    %38 = vector.shape_cast %35 : vector<8x32xbf16> to vector<1x8x32xbf16>
    tpu.vector_store %arg15[%c0_16, %c0_17, %c0_18], %38 {strides = array<i32>} : memref<3x8x32xbf16, #tpu.memory_space<vmem>>, vector<1x8x32xbf16>,
    %39 = vector.extract_strided_slice %31 {offsets = [0, 32], sizes = [8, 32], strides = [1, 1]} : vector<8x96xf32> to vector<8x32xf32>
    %40 = arith.truncf %39 : vector<8x32xf32> to vector<8x32xbf16>
    %c1 = arith.constant 1 : index
    %c0_19 = arith.constant 0 : index
    %c0_20 = arith.constant 0 : index
    %41 = vector.load %arg15[%c1, %c0_19, %c0_20] : memref<3x8x32xbf16, #tpu.memory_space<vmem>>, vector<1x8x32xbf16>
    %42 = vector.shape_cast %41 : vector<1x8x32xbf16> to vector<8x32xbf16>
    %43 = vector.shape_cast %40 : vector<8x32xbf16> to vector<1x8x32xbf16>
    tpu.vector_store %arg15[%c1, %c0_19, %c0_20], %43 {strides = array<i32>} : memref<3x8x32xbf16, #tpu.memory_space<vmem>>, vector<1x8x32xbf16>,
    %44 = vector.extract_strided_slice %31 {offsets = [0, 64], sizes = [8, 32], strides = [1, 1]} : vector<8x96xf32> to vector<8x32xf32>
    %45 = arith.truncf %44 : vector<8x32xf32> to vector<8x32xbf16>
    %c2 = arith.constant 2 : index
    %c0_21 = arith.constant 0 : index
    %c0_22 = arith.constant 0 : index
    %46 = vector.load %arg15[%c2, %c0_21, %c0_22] : memref<3x8x32xbf16, #tpu.memory_space<vmem>>, vector<1x8x32xbf16>
    %47 = vector.shape_cast %46 : vector<1x8x32xbf16> to vector<8x32xbf16>
    %48 = vector.shape_cast %45 : vector<8x32xbf16> to vector<1x8x32xbf16>
    tpu.vector_store %arg15[%c2, %c0_21, %c0_22], %48 {strides = array<i32>} : memref<3x8x32xbf16, #tpu.memory_space<vmem>>, vector<1x8x32xbf16>,
    %c0_23 = arith.constant 0 : index
    %c0_24 = arith.constant 0 : index
    %c0_25 = arith.constant 0 : index
    %49 = vector.load %arg15[%c0_23, %c0_24, %c0_25] : memref<3x8x32xbf16, #tpu.memory_space<vmem>>, vector<1x8x8xbf16>
    %50 = vector.shape_cast %49 : vector<1x8x8xbf16> to vector<8x8xbf16>
    %c1_26 = arith.constant 1 : index
    %c0_27 = arith.constant 0 : index
    %c0_28 = arith.constant 0 : index
    %51 = vector.load %arg15[%c1_26, %c0_27, %c0_28] : memref<3x8x32xbf16, #tpu.memory_space<vmem>>, vector<1x8x8xbf16>
    %52 = vector.shape_cast %51 : vector<1x8x8xbf16> to vector<8x8xbf16>
    %c2_29 = arith.constant 2 : index
    %c0_30 = arith.constant 0 : index
    %c0_31 = arith.constant 0 : index
    %53 = vector.load %arg15[%c2_29, %c0_30, %c0_31] : memref<3x8x32xbf16, #tpu.memory_space<vmem>>, vector<1x8x8xbf16>
    %54 = vector.shape_cast %53 : vector<1x8x8xbf16> to vector<8x8xbf16>
    %cst_32 = arith.constant dense<0.000000e+00> : vector<8x8xf32>
    %55 = tpu.matmul %50, %52, %cst_32 {dimension_numbers = #tpu.dot_dimension_numbers<[1], [1], [0], [0], [0, 0, 1, 0], [], []>} : vector<8x8xbf16>, vector<8x8xbf16>, vector<8x8xf32> -> vector<8x8xf32>
    %cst_33 = arith.constant dense<0xFF800000> : vector<8xf32>
    %56 = vector.multi_reduction <maximumf>, %55, %cst_33 [1] : vector<8x8xf32> to vector<8xf32>
    %57 = vector.shape_cast %56 : vector<8xf32> to vector<8x1xf32>
    %58 = vector.broadcast %57 : vector<8x1xf32> to vector<8x8xf32>
    %59 = arith.subf %55, %58 : vector<8x8xf32>
    %60 = math.exp %59 : vector<8x8xf32>
    %cst_34 = arith.constant dense<0.000000e+00> : vector<8xf32>
    %61 = vector.multi_reduction <add>, %60, %cst_34 [1] : vector<8x8xf32> to vector<8xf32>
    %62 = vector.shape_cast %61 : vector<8xf32> to vector<8x1xf32>
    %63 = tpu.reciprocal %62 {approx = true} : vector<8x1xf32> -> vector<8x1xf32>
    %64 = vector.broadcast %63 : vector<8x1xf32> to vector<8x8xf32>
    %65 = arith.mulf %60, %64 : vector<8x8xf32>
    %66 = arith.truncf %65 : vector<8x8xf32> to vector<8x8xbf16>
    %cst_35 = arith.constant dense<0.000000e+00> : vector<8x8xf32>
    %67 = tpu.matmul %66, %54, %cst_35 {dimension_numbers = #tpu.dot_dimension_numbers<[1], [0], [0], [1], [0, 0, 1, 1], [], []>} : vector<8x8xbf16>, vector<8x8xbf16>, vector<8x8xf32> -> vector<8x8xf32>
    %68 = arith.truncf %67 : vector<8x8xf32> to vector<8x8xbf16>
    %c0_36 = arith.constant 0 : index
    %c0_37 = arith.constant 0 : index
    %69 = vector.load %arg16[%c0_36, %c0_37] : memref<8x32xbf16, #tpu.memory_space<vmem>>, vector<8x8xbf16>
    tpu.vector_store %arg16[%c0_36, %c0_37], %68 {strides = array<i32>} : memref<8x32xbf16, #tpu.memory_space<vmem>>, vector<8x8xbf16>,
    %c0_38 = arith.constant 0 : index
    %c0_39 = arith.constant 0 : index
    %c8 = arith.constant 8 : index
    %70 = vector.load %arg15[%c0_38, %c0_39, %c8] : memref<3x8x32xbf16, #tpu.memory_space<vmem>>, vector<1x8x8xbf16>
    %71 = vector.shape_cast %70 : vector<1x8x8xbf16> to vector<8x8xbf16>
    %c1_40 = arith.constant 1 : index
    %c0_41 = arith.constant 0 : index
    %c8_42 = arith.constant 8 : index
    %72 = vector.load %arg15[%c1_40, %c0_41, %c8_42] : memref<3x8x32xbf16, #tpu.memory_space<vmem>>, vector<1x8x8xbf16>
    %73 = vector.shape_cast %72 : vector<1x8x8xbf16> to vector<8x8xbf16>
    %c2_43 = arith.constant 2 : index
    %c0_44 = arith.constant 0 : index
    %c8_45 = arith.constant 8 : index
    %74 = vector.load %arg15[%c2_43, %c0_44, %c8_45] : memref<3x8x32xbf16, #tpu.memory_space<vmem>>, vector<1x8x8xbf16>
    %75 = vector.shape_cast %74 : vector<1x8x8xbf16> to vector<8x8xbf16>
    %cst_46 = arith.constant dense<0.000000e+00> : vector<8x8xf32>
    %76 = tpu.matmul %71, %73, %cst_46 {dimension_numbers = #tpu.dot_dimension_numbers<[1], [1], [0], [0], [0, 0, 1, 0], [], []>} : vector<8x8xbf16>, vector<8x8xbf16>, vector<8x8xf32> -> vector<8x8xf32>
    %cst_47 = arith.constant dense<0xFF800000> : vector<8xf32>
    %77 = vector.multi_reduction <maximumf>, %76, %cst_47 [1] : vector<8x8xf32> to vector<8xf32>
    %78 = vector.shape_cast %77 : vector<8xf32> to vector<8x1xf32>
    %79 = vector.broadcast %78 : vector<8x1xf32> to vector<8x8xf32>
    %80 = arith.subf %76, %79 : vector<8x8xf32>
    %81 = math.exp %80 : vector<8x8xf32>
    %cst_48 = arith.constant dense<0.000000e+00> : vector<8xf32>
    %82 = vector.multi_reduction <add>, %81, %cst_48 [1] : vector<8x8xf32> to vector<8xf32>
    %83 = vector.shape_cast %82 : vector<8xf32> to vector<8x1xf32>
    %84 = tpu.reciprocal %83 {approx = true} : vector<8x1xf32> -> vector<8x1xf32>
    %85 = vector.broadcast %84 : vector<8x1xf32> to vector<8x8xf32>
    %86 = arith.mulf %81, %85 : vector<8x8xf32>
    %87 = arith.truncf %86 : vector<8x8xf32> to vector<8x8xbf16>
    %cst_49 = arith.constant dense<0.000000e+00> : vector<8x8xf32>
    %88 = tpu.matmul %87, %75, %cst_49 {dimension_numbers = #tpu.dot_dimension_numbers<[1], [0], [0], [1], [0, 0, 1, 1], [], []>} : vector<8x8xbf16>, vector<8x8xbf16>, vector<8x8xf32> -> vector<8x8xf32>
    %89 = arith.truncf %88 : vector<8x8xf32> to vector<8x8xbf16>
    %c0_50 = arith.constant 0 : index
    %c8_51 = arith.constant 8 : index
    %90 = vector.load %arg16[%c0_50, %c8_51] : memref<8x32xbf16, #tpu.memory_space<vmem>>, vector<8x8xbf16>
    tpu.vector_store %arg16[%c0_50, %c8_51], %89 {strides = array<i32>} : memref<8x32xbf16, #tpu.memory_space<vmem>>, vector<8x8xbf16>,
    %c0_52 = arith.constant 0 : index
    %c0_53 = arith.constant 0 : index
    %c16 = arith.constant 16 : index
    %91 = vector.load %arg15[%c0_52, %c0_53, %c16] : memref<3x8x32xbf16, #tpu.memory_space<vmem>>, vector<1x8x8xbf16>
    %92 = vector.shape_cast %91 : vector<1x8x8xbf16> to vector<8x8xbf16>
    %c1_54 = arith.constant 1 : index
    %c0_55 = arith.constant 0 : index
    %c16_56 = arith.constant 16 : index
    %93 = vector.load %arg15[%c1_54, %c0_55, %c16_56] : memref<3x8x32xbf16, #tpu.memory_space<vmem>>, vector<1x8x8xbf16>
    %94 = vector.shape_cast %93 : vector<1x8x8xbf16> to vector<8x8xbf16>
    %c2_57 = arith.constant 2 : index
    %c0_58 = arith.constant 0 : index
    %c16_59 = arith.constant 16 : index
    %95 = vector.load %arg15[%c2_57, %c0_58, %c16_59] : memref<3x8x32xbf16, #tpu.memory_space<vmem>>, vector<1x8x8xbf16>
    %96 = vector.shape_cast %95 : vector<1x8x8xbf16> to vector<8x8xbf16>
    %cst_60 = arith.constant dense<0.000000e+00> : vector<8x8xf32>
    %97 = tpu.matmul %92, %94, %cst_60 {dimension_numbers = #tpu.dot_dimension_numbers<[1], [1], [0], [0], [0, 0, 1, 0], [], []>} : vector<8x8xbf16>, vector<8x8xbf16>, vector<8x8xf32> -> vector<8x8xf32>
    %cst_61 = arith.constant dense<0xFF800000> : vector<8xf32>
    %98 = vector.multi_reduction <maximumf>, %97, %cst_61 [1] : vector<8x8xf32> to vector<8xf32>
    %99 = vector.shape_cast %98 : vector<8xf32> to vector<8x1xf32>
    %100 = vector.broadcast %99 : vector<8x1xf32> to vector<8x8xf32>
    %101 = arith.subf %97, %100 : vector<8x8xf32>
    %102 = math.exp %101 : vector<8x8xf32>
    %cst_62 = arith.constant dense<0.000000e+00> : vector<8xf32>
    %103 = vector.multi_reduction <add>, %102, %cst_62 [1] : vector<8x8xf32> to vector<8xf32>
    %104 = vector.shape_cast %103 : vector<8xf32> to vector<8x1xf32>
    %105 = tpu.reciprocal %104 {approx = true} : vector<8x1xf32> -> vector<8x1xf32>
    %106 = vector.broadcast %105 : vector<8x1xf32> to vector<8x8xf32>
    %107 = arith.mulf %102, %106 : vector<8x8xf32>
    %108 = arith.truncf %107 : vector<8x8xf32> to vector<8x8xbf16>
    %cst_63 = arith.constant dense<0.000000e+00> : vector<8x8xf32>
    %109 = tpu.matmul %108, %96, %cst_63 {dimension_numbers = #tpu.dot_dimension_numbers<[1], [0], [0], [1], [0, 0, 1, 1], [], []>} : vector<8x8xbf16>, vector<8x8xbf16>, vector<8x8xf32> -> vector<8x8xf32>
    %110 = arith.truncf %109 : vector<8x8xf32> to vector<8x8xbf16>
    %c0_64 = arith.constant 0 : index
    %c16_65 = arith.constant 16 : index
    %111 = vector.load %arg16[%c0_64, %c16_65] : memref<8x32xbf16, #tpu.memory_space<vmem>>, vector<8x8xbf16>
    tpu.vector_store %arg16[%c0_64, %c16_65], %110 {strides = array<i32>} : memref<8x32xbf16, #tpu.memory_space<vmem>>, vector<8x8xbf16>,
    %c0_66 = arith.constant 0 : index
    %c0_67 = arith.constant 0 : index
    %c24 = arith.constant 24 : index
    %112 = vector.load %arg15[%c0_66, %c0_67, %c24] : memref<3x8x32xbf16, #tpu.memory_space<vmem>>, vector<1x8x8xbf16>
    %113 = vector.shape_cast %112 : vector<1x8x8xbf16> to vector<8x8xbf16>
    %c1_68 = arith.constant 1 : index
    %c0_69 = arith.constant 0 : index
    %c24_70 = arith.constant 24 : index
    %114 = vector.load %arg15[%c1_68, %c0_69, %c24_70] : memref<3x8x32xbf16, #tpu.memory_space<vmem>>, vector<1x8x8xbf16>
    %115 = vector.shape_cast %114 : vector<1x8x8xbf16> to vector<8x8xbf16>
    %c2_71 = arith.constant 2 : index
    %c0_72 = arith.constant 0 : index
    %c24_73 = arith.constant 24 : index
    %116 = vector.load %arg15[%c2_71, %c0_72, %c24_73] : memref<3x8x32xbf16, #tpu.memory_space<vmem>>, vector<1x8x8xbf16>
    %117 = vector.shape_cast %116 : vector<1x8x8xbf16> to vector<8x8xbf16>
    %cst_74 = arith.constant dense<0.000000e+00> : vector<8x8xf32>
    %118 = tpu.matmul %113, %115, %cst_74 {dimension_numbers = #tpu.dot_dimension_numbers<[1], [1], [0], [0], [0, 0, 1, 0], [], []>} : vector<8x8xbf16>, vector<8x8xbf16>, vector<8x8xf32> -> vector<8x8xf32>
    %cst_75 = arith.constant dense<0xFF800000> : vector<8xf32>
    %119 = vector.multi_reduction <maximumf>, %118, %cst_75 [1] : vector<8x8xf32> to vector<8xf32>
    %120 = vector.shape_cast %119 : vector<8xf32> to vector<8x1xf32>
    %121 = vector.broadcast %120 : vector<8x1xf32> to vector<8x8xf32>
    %122 = arith.subf %118, %121 : vector<8x8xf32>
    %123 = math.exp %122 : vector<8x8xf32>
    %cst_76 = arith.constant dense<0.000000e+00> : vector<8xf32>
    %124 = vector.multi_reduction <add>, %123, %cst_76 [1] : vector<8x8xf32> to vector<8xf32>
    %125 = vector.shape_cast %124 : vector<8xf32> to vector<8x1xf32>
    %126 = tpu.reciprocal %125 {approx = true} : vector<8x1xf32> -> vector<8x1xf32>
    %127 = vector.broadcast %126 : vector<8x1xf32> to vector<8x8xf32>
    %128 = arith.mulf %123, %127 : vector<8x8xf32>
    %129 = arith.truncf %128 : vector<8x8xf32> to vector<8x8xbf16>
    %cst_77 = arith.constant dense<0.000000e+00> : vector<8x8xf32>
    %130 = tpu.matmul %129, %117, %cst_77 {dimension_numbers = #tpu.dot_dimension_numbers<[1], [0], [0], [1], [0, 0, 1, 1], [], []>} : vector<8x8xbf16>, vector<8x8xbf16>, vector<8x8xf32> -> vector<8x8xf32>
    %131 = arith.truncf %130 : vector<8x8xf32> to vector<8x8xbf16>
    %c0_78 = arith.constant 0 : index
    %c24_79 = arith.constant 24 : index
    %132 = vector.load %arg16[%c0_78, %c24_79] : memref<8x32xbf16, #tpu.memory_space<vmem>>, vector<8x8xbf16>
    tpu.vector_store %arg16[%c0_78, %c24_79], %131 {strides = array<i32>} : memref<8x32xbf16, #tpu.memory_space<vmem>>, vector<8x8xbf16>,
    %c0_80 = arith.constant 0 : index
    %c0_81 = arith.constant 0 : index
    %133 = vector.load %arg16[%c0_80, %c0_81] : memref<8x32xbf16, #tpu.memory_space<vmem>>, vector<8x32xbf16>
    %c0_82 = arith.constant 0 : index
    %c0_83 = arith.constant 0 : index
    %134 = vector.load %arg6[%c0_82, %c0_83] : memref<32x32xbf16, #tpu.memory_space<vmem>>, vector<32x32xbf16>
    %cst_84 = arith.constant dense<0.000000e+00> : vector<8x32xf32>
    %135 = tpu.matmul %133, %134, %cst_84 {dimension_numbers = #tpu.dot_dimension_numbers<[1], [0], [0], [1], [0, 0, 1, 1], [], []>} : vector<8x32xbf16>, vector<32x32xbf16>, vector<8x32xf32> -> vector<8x32xf32>
    %c0_85 = arith.constant 0 : index
    %c0_86 = arith.constant 0 : index
    %136 = vector.load %arg7[%c0_85, %c0_86] : memref<1x32xf32, #tpu.memory_space<vmem>>, vector<1x32xf32>
    %137 = vector.broadcast %136 : vector<1x32xf32> to vector<8x32xf32>
    %138 = arith.addf %135, %137 : vector<8x32xf32>
    %139 = arith.addf %1, %138 : vector<8x32xf32>
    %c0_87 = arith.constant 0 : index
    %c0_88 = arith.constant 0 : index
    %140 = vector.load %arg8[%c0_87, %c0_88] : memref<1x32xf32, #tpu.memory_space<vmem>>, vector<1x32xf32>
    %c0_89 = arith.constant 0 : index
    %c0_90 = arith.constant 0 : index
    %141 = vector.load %arg9[%c0_89, %c0_90] : memref<1x32xf32, #tpu.memory_space<vmem>>, vector<1x32xf32>
    %cst_91 = arith.constant dense<0.000000e+00> : vector<8xf32>
    %142 = vector.multi_reduction <add>, %139, %cst_91 [1] : vector<8x32xf32> to vector<8xf32>
    %143 = vector.shape_cast %142 : vector<8xf32> to vector<8x1xf32>
    %cst_92 = arith.constant 3.200000e+01 : f32
    %144 = vector.broadcast %cst_92 : f32 to vector<8x1xf32>
    %145 = arith.divf %143, %144 : vector<8x1xf32>
    %146 = vector.broadcast %145 : vector<8x1xf32> to vector<8x32xf32>
    %147 = arith.subf %139, %146 : vector<8x32xf32>
    %148 = arith.mulf %147, %147 : vector<8x32xf32>
    %cst_93 = arith.constant dense<0.000000e+00> : vector<8xf32>
    %149 = vector.multi_reduction <add>, %148, %cst_93 [1] : vector<8x32xf32> to vector<8xf32>
    %150 = vector.shape_cast %149 : vector<8xf32> to vector<8x1xf32>
    %cst_94 = arith.constant 3.200000e+01 : f32
    %151 = vector.broadcast %cst_94 : f32 to vector<8x1xf32>
    %152 = arith.divf %150, %151 : vector<8x1xf32>
    %153 = vector.broadcast %145 : vector<8x1xf32> to vector<8x32xf32>
    %154 = arith.subf %139, %153 : vector<8x32xf32>
    %cst_95 = arith.constant 9.99999974E-6 : f32
    %155 = vector.broadcast %cst_95 : f32 to vector<8x1xf32>
    %156 = arith.addf %152, %155 : vector<8x1xf32>
    %157 = math.rsqrt %156 : vector<8x1xf32>
    %158 = vector.broadcast %157 : vector<8x1xf32> to vector<8x32xf32>
    %159 = arith.mulf %154, %158 : vector<8x32xf32>
    %160 = vector.broadcast %140 : vector<1x32xf32> to vector<8x32xf32>
    %161 = arith.mulf %159, %160 : vector<8x32xf32>
    %162 = vector.broadcast %141 : vector<1x32xf32> to vector<8x32xf32>
    %163 = arith.addf %161, %162 : vector<8x32xf32>
    %164 = arith.truncf %163 : vector<8x32xf32> to vector<8x32xbf16>
    %c0_96 = arith.constant 0 : index
    %c0_97 = arith.constant 0 : index
    %165 = vector.load %arg10[%c0_96, %c0_97] : memref<32x64xbf16, #tpu.memory_space<vmem>>, vector<32x64xbf16>
    %cst_98 = arith.constant dense<0.000000e+00> : vector<8x64xf32>
    %166 = tpu.matmul %164, %165, %cst_98 {dimension_numbers = #tpu.dot_dimension_numbers<[1], [0], [0], [1], [0, 0, 1, 1], [], []>} : vector<8x32xbf16>, vector<32x64xbf16>, vector<8x64xf32> -> vector<8x64xf32>
    %c0_99 = arith.constant 0 : index
    %c0_100 = arith.constant 0 : index
    %167 = vector.load %arg11[%c0_99, %c0_100] : memref<1x64xf32, #tpu.memory_space<vmem>>, vector<1x64xf32>
    %168 = vector.broadcast %167 : vector<1x64xf32> to vector<8x64xf32>
    %169 = arith.addf %166, %168 : vector<8x64xf32>
    %cst_101 = arith.constant 5.000000e-01 : f32
    %170 = vector.broadcast %cst_101 : f32 to vector<8x64xf32>
    %171 = arith.mulf %170, %169 : vector<8x64xf32>
    %cst_102 = arith.constant 0.707106769 : f32
    %172 = vector.broadcast %cst_102 : f32 to vector<8x64xf32>
    %173 = arith.mulf %169, %172 : vector<8x64xf32>
    %174 = math.erf %173 : vector<8x64xf32>
    %cst_103 = arith.constant 1.000000e+00 : f32
    %175 = vector.broadcast %cst_103 : f32 to vector<8x64xf32>
    %176 = arith.addf %175, %174 : vector<8x64xf32>
    %177 = arith.mulf %171, %176 : vector<8x64xf32>
    %178 = arith.truncf %177 : vector<8x64xf32> to vector<8x64xbf16>
    %c0_104 = arith.constant 0 : index
    %c0_105 = arith.constant 0 : index
    %179 = vector.load %arg12[%c0_104, %c0_105] : memref<64x32xbf16, #tpu.memory_space<vmem>>, vector<64x32xbf16>
    %cst_106 = arith.constant dense<0.000000e+00> : vector<8x32xf32>
    %180 = tpu.matmul %178, %179, %cst_106 {dimension_numbers = #tpu.dot_dimension_numbers<[1], [0], [0], [1], [0, 0, 1, 1], [], []>} : vector<8x64xbf16>, vector<64x32xbf16>, vector<8x32xf32> -> vector<8x32xf32>
    %c0_107 = arith.constant 0 : index
    %c0_108 = arith.constant 0 : index
    %181 = vector.load %arg13[%c0_107, %c0_108] : memref<1x32xf32, #tpu.memory_space<vmem>>, vector<1x32xf32>
    %182 = vector.broadcast %181 : vector<1x32xf32> to vector<8x32xf32>
    %183 = arith.addf %180, %182 : vector<8x32xf32>
    %184 = arith.addf %139, %183 : vector<8x32xf32>
    %c0_109 = arith.constant 0 : index
    %c0_110 = arith.constant 0 : index
    %c0_111 = arith.constant 0 : index
    %185 = vector.load %arg14[%c0_109, %c0_110, %c0_111] : memref<1x8x32xf32, #tpu.memory_space<vmem>>, vector<1x8x32xf32>
    %186 = vector.shape_cast %185 : vector<1x8x32xf32> to vector<8x32xf32>
    %187 = vector.shape_cast %184 : vector<8x32xf32> to vector<1x8x32xf32>
    tpu.vector_store %arg14[%c0_109, %c0_110, %c0_111], %187 {strides = array<i32>} : memref<1x8x32xf32, #tpu.memory_space<vmem>>, vector<1x8x32xf32>,
    return
  }
  func.func @transform_0(%arg0: i32) -> (i32, i32, i32) {
    %c0_i32 = arith.constant 0 : i32
    %c0_i32_0 = arith.constant 0 : i32
    %c0_i32_1 = arith.constant 0 : i32
    return %arg0, %c0_i32, %c0_i32_0 : i32, i32, i32
  }
  func.func @transform_1(%arg0: i32) -> (i32, i32) {
    %c0_i32 = arith.constant 0 : i32
    %c0_i32_0 = arith.constant 0 : i32
    %c0_i32_1 = arith.constant 0 : i32
    return %c0_i32, %c0_i32_0 : i32, i32
  }
  func.func @transform_2(%arg0: i32) -> (i32, i32) {
    %c0_i32 = arith.constant 0 : i32
    %c0_i32_0 = arith.constant 0 : i32
    %c0_i32_1 = arith.constant 0 : i32
    return %c0_i32, %c0_i32_0 : i32, i32
  }
  func.func @transform_3(%arg0: i32) -> (i32, i32) {
    %c0_i32 = arith.constant 0 : i32
    %c0_i32_0 = arith.constant 0 : i32
    %c0_i32_1 = arith.constant 0 : i32
    return %c0_i32, %c0_i32_0 : i32, i32
  }
  func.func @transform_4(%arg0: i32) -> (i32, i32) {
    %c0_i32 = arith.constant 0 : i32
    %c0_i32_0 = arith.constant 0 : i32
    %c0_i32_1 = arith.constant 0 : i32
    return %c0_i32, %c0_i32_0 : i32, i32
  }
  func.func @transform_5(%arg0: i32) -> (i32, i32) {
    %c0_i32 = arith.constant 0 : i32
    %c0_i32_0 = arith.constant 0 : i32
    %c0_i32_1 = arith.constant 0 : i32
    return %c0_i32, %c0_i32_0 : i32, i32
  }
  func.func @transform_6(%arg0: i32) -> (i32, i32) {
    %c0_i32 = arith.constant 0 : i32
    %c0_i32_0 = arith.constant 0 : i32
    %c0_i32_1 = arith.constant 0 : i32
    return %c0_i32, %c0_i32_0 : i32, i32
  }
  func.func @transform_7(%arg0: i32) -> (i32, i32) {
    %c0_i32 = arith.constant 0 : i32
    %c0_i32_0 = arith.constant 0 : i32
    %c0_i32_1 = arith.constant 0 : i32
    return %c0_i32, %c0_i32_0 : i32, i32
  }
  func.func @transform_8(%arg0: i32) -> (i32, i32) {
    %c0_i32 = arith.constant 0 : i32
    %c0_i32_0 = arith.constant 0 : i32
    %c0_i32_1 = arith.constant 0 : i32
    return %c0_i32, %c0_i32_0 : i32, i32
  }
  func.func @transform_9(%arg0: i32) -> (i32, i32) {
    %c0_i32 = arith.constant 0 : i32
    %c0_i32_0 = arith.constant 0 : i32
    %c0_i32_1 = arith.constant 0 : i32
    return %c0_i32, %c0_i32_0 : i32, i32
  }
  func.func @transform_10(%arg0: i32) -> (i32, i32) {
    %c0_i32 = arith.constant 0 : i32
    %c0_i32_0 = arith.constant 0 : i32
    %c0_i32_1 = arith.constant 0 : i32
    return %c0_i32, %c0_i32_0 : i32, i32
  }
  func.func @transform_11(%arg0: i32) -> (i32, i32) {
    %c0_i32 = arith.constant 0 : i32
    %c0_i32_0 = arith.constant 0 : i32
    %c0_i32_1 = arith.constant 0 : i32
    return %c0_i32, %c0_i32_0 : i32, i32
  }
  func.func @transform_12(%arg0: i32) -> (i32, i32) {
    %c0_i32 = arith.constant 0 : i32
    %c0_i32_0 = arith.constant 0 : i32
    %c0_i32_1 = arith.constant 0 : i32
    return %c0_i32, %c0_i32_0 : i32, i32
  }
  func.func @transform_13(%arg0: i32) -> (i32, i32, i32) {
    %c0_i32 = arith.constant 0 : i32
    %c0_i32_0 = arith.constant 0 : i32
    %c0_i32_1 = arith.constant 0 : i32
    return %arg0, %c0_i32, %c0_i32_0 : i32, i32, i32
  }
}

</mosaic_0001>

<bundles_post_ra>
// kernel: tpu_custom_call.1
= control target key start
LH: loop header
LB: loop body
LE: loop exit
PB: predicated region body
PF: predicated region fallthrough
CT: control target
= control target key end

     0   :  { %s2425_s0 = inlined_call_operand.vmem [shape: f32[2,8,32], index: 0, kind: input, shape index: {}]   ;;  %s2426_s1 = inlined_call_operand.vmem [shape: f32[1,32], index: 1, kind: input, shape index: {}]   ;;  %s2427_s2 = inlined_call_operand.vmem [shape: f32[1,32], index: 2, kind: input, shape index: {}]   ;;  %s2428_s3 = inlined_call_operand.vmem [shape: bf16[32,96], index: 3, kind: input, shape index: {}]   ;;  %s2429_s4 = inlined_call_operand.hbm [shape: f32[1,96], index: 4, kind: input, shape index: {}]   ;;  %s2430_s5 = inlined_call_operand.vmem [shape: bf16[32,32], index: 5, kind: input, shape index: {}]   ;;  %s2431_s6 = inlined_call_operand.hbm [shape: f32[1,32], index: 6, kind: input, shape index: {}]   ;;  %s2432_s7 = inlined_call_operand.hbm [shape: f32[1,32], index: 7, kind: input, shape index: {}]   ;;  %s2433_s8 = inlined_call_operand.hbm [shape: f32[1,32], index: 8, kind: input, shape index: {}]   ;;  %s2434_s9 = inlined_call_operand.vmem [shape: bf16[32,64], index: 9, kind: input, shape index: {}]   ;;  %s2435_s10 = inlined_call_operand.vmem [shape: f32[1,64], index: 10, kind: input, shape index: {}]   ;;  %s2436_s11 = inlined_call_operand.vmem [shape: bf16[64,32], index: 11, kind: input, shape index: {}]   ;;  %s2437_s12 = inlined_call_operand.vmem [shape: f32[1,32], index: 12, kind: input, shape index: {}]   ;;  %s2438_s13 = inlined_call_operand.hbm [shape: f32[2,8,32], index: 13, kind: output, shape index: {}]  }
   0x1   :  { %2449 = sst [smem:[#allocation23_spill]] %s2438_s13 }
   0x2   :  { %18 = vsyncpa [#allocation5], 0 }
   0x3   :  { %19 = vsyncpa [#allocation8], 0 }
   0x4   :  { %20 = vsyncpa [#allocation11], 0 }
   0x5   :  { %21 = vsyncpa [#allocation6], 0 }
   0x6   :  { %23 = vsyncpa [#allocation6 + $0x1], 0  ;;  %s2062_s25 = smov 0   ;;  %s2064_s26 = smov 0  }
   0x7   :  { %s2066_s27 = smov 0   ;;  %s2068_s28 = smov 0  }
   0x8 LB: > { %2450 = sst [smem:[#allocation17_spill]] %s1963_s25  ;;  %s2083_s29 = sadd.s32 4294967295, %s1975_s28   ;;  %s1975_s28 = sphi %s2068_s28, %s2475_s28   ;;  %s1971_s27 = sphi %s2066_s27, %s2477_s27   ;;  %s1967_s26 = sphi %s2064_s26, %s2479_s26   ;;  %s1963_s25 = sphi %s2062_s25, %s2478_s25  }
   0x9   : > { %2451 = sst [smem:[#allocation18_spill]] %s1971_s27  ;;  %s1479_s30 = sadd.s32 4294967294, %s1975_s28  }
   0xa   : > { %2452 = sst [smem:[#allocation19_spill]] %s1975_s28  ;;  %s2087_s14 = sadd.s32 1, %s1975_s28  }
   0xb   : > { %2453 = sst [smem:[#allocation20_spill]] %s2087_s14  ;;  %s314_s15 = sadd.s32 1, %s1971_s27 }
   0xc   : > { %s311_s16 = ssub.s32 %s1975_s28, %s2087_s14  ;;  %p324_p0 = scmp.ne.s32.totalorder %s1971_s27, %s1967_s26 }
   0xd   : > { %p312_p1 = scmp.eq.s32.totalorder %s311_s16, 0  ;;  %p325_p2 = scmp.eq.s32.totalorder %s2083_s29, 1 }
   0xe   : > { %p330_p3 = scmp.ne.s32.totalorder %s1967_s26, %s1963_s25  ;;  %p331_p4 = scmp.eq.s32.totalorder %s1479_s30, 1 }
   0xf   : > { %s2098_s17 = scalar_select %p312_p1, %s1971_s27, %s314_s15  }
  0x10   : > { %p2100_p5 = por %p325_p2, %p324_p0  ;;  %p2104_p6 = por %p331_p4, %p330_p3 }
  0x11   : > { %2454 = sst [smem:[#allocation21_spill]] %s2098_s17  ;;  %p1480_p7 = scmp.ge.s32.totalorder %s1975_s28, 1 }
  0x12   : > { %s2455_s18 = scalar_select %p2100_p5, 1, 0 }
  0x13   : > { %s2456_s19 = scalar_select %p2104_p6, 1, 0 }
  0x14   : > { %p338_p8 = scmp.lt.s32.totalorder %s1975_s28, 3  ;;  %p2444_p9 = scmp.eq.s32.totalorder %s2083_s29, 0 }
  0x15   : > { %2457 = sst [smem:[#allocation22_spill]] %s2456_s19  ;;  %s1977_s21 = smov [#allocation7]  }
  0x16   : > { %p2111_p10 = pnand %p1480_p7, %p338_p8  ;;  %s374_s22 = sshll.u32 %s1977_s21, 4  ;;  %s375_s22 = int_to_ptr.vmem [resolvable:$true] %s374_s22 }
  0x17   : > { %s1978_s23 = smov [#allocation4]   ;;  %s1979_s15 = smov [#allocation9]  }
  0x18   : > { %s2458_s20 = scalar_select %p2111_p10, 1, 0 }
  0x19   : > { %p1676_p11 = pneg %p2111_p10  ;;  %s360_s24 = sshll.u32 %s1978_s23, 4  ;;  %s2123_s24 = int_to_ptr.vmem [resolvable:$true] %s360_s24 }
  0x1a   : > { %s385_s16 = sshll.u32 %s1979_s15, 4  ;;  %s1789_s21 = scalar_lea.hbm %s2431_s6, 16  ;;  %s2125_s16 = int_to_ptr.vmem [resolvable:$true] %s385_s16 }
  0x1b   : > { %p2119_p12 = pnand %p2444_p9, %p1676_p11  ;;  %p1790_p13 = scmp.ne.s32.totalorder %s2431_s6, %s1789_s21 }
  0x1c   : > { %p1796_p3 = scmp.lt.u32.totalorder %s1789_s21, %s2431_s6 }
  0x1d   : > { %p2135_p0 = pneg %p2119_p12 }
  0x1f   : > { %p1792_p1 = pnand %p2135_p0, %p1790_p13 }
  0x21   : > { %p1793_p2 = pneg %p1792_p1 }
  0x23   : > { %p1798_p4 = pnand %p1796_p3, %p1793_p2 }
  0x25   : > { %1801 = shalt.err (!%p1798_p4)
}
  0x26   : > { %s1802_s27 = scalar_lea.vmem %s375_s22, 16  ;;  %s1809_s14 = scalar_lea.vmem %s375_s22, 32 }
  0x27   : > { %p1803_p7 = scmp.ne.s32.totalorder %s375_s22, %s1802_s27  ;;  %p1810_p9 = scmp.lt.s32.totalorder %s375_s22, %s375_s22 }
  0x28   : > { %p1811_p6 = scmp.lt.s32.totalorder %s1809_s14, %s1802_s27 }
  0x29   : > { %p1805_p8 = pnand %p1803_p7, %p2135_p0 }
  0x2a   : > { %p1812_p5 = por %p1811_p6, %p1810_p9 }
  0x2b   : > { %p1806_p11 = pneg %p1805_p8 }
  0x2d   : > { %p1813_p10 = pnand %p1812_p5, %p1806_p11 }
  0x2f   : > { %1816 = shalt.err (!%p1813_p10)
}
  0x30   : > { %1682 = dma.hbm_to_vmem [thread:$0]  (!%p2119_p12), %s2431_s6, 16, %s375_s22, [#allocation8]  }
  0x31   : > { %s1817_s15 = scalar_lea.hbm %s2429_s4, 16 }
  0x32   : > { %p1818_p13 = scmp.ne.s32.totalorder %s2429_s4, %s1817_s15  ;;  %p1824_p5 = scmp.lt.u32.totalorder %s1817_s15, %s2429_s4 }
  0x34   : > { %p1820_p1 = pnand %p1818_p13, %p2135_p0 }
  0x36   : > { %p1821_p6 = pneg %p1820_p1 }
  0x38   : > { %p1826_p9 = pnand %p1824_p5, %p1821_p6 }
  0x3a   : > { %1829 = shalt.err (!%p1826_p9)
}
  0x3b   : > { %s1830_s22 = scalar_lea.vmem %s2123_s24, 16  ;;  %s1837_s13 = scalar_lea.vmem %s2123_s24, 32 }
  0x3c   : > { %p1831_p10 = scmp.ne.s32.totalorder %s2123_s24, %s1830_s22  ;;  %p1838_p4 = scmp.lt.s32.totalorder %s2123_s24, %s2123_s24 }
  0x3d   : > { %p1839_p7 = scmp.lt.s32.totalorder %s1837_s13, %s1830_s22 }
  0x3e   : > { %p1833_p2 = pnand %p1831_p10, %p2135_p0 }
  0x3f   : > { %p1840_p8 = por %p1839_p7, %p1838_p4 }
  0x40   : > { %p1834_p3 = pneg %p1833_p2 }
  0x42   : > { %p1841_p11 = pnand %p1840_p8, %p1834_p3 }
  0x44   : > { %1844 = shalt.err (!%p1841_p11)
}
  0x45   : > { %1679 = dma.hbm_to_vmem [thread:$0]  (!%p2119_p12), %s2429_s4, 16, %s2123_s24, [#allocation5]  }
  0x46   : > { %s1845_s21 = scalar_lea.hbm %s2432_s7, 16 }
  0x47   : > { %p1846_p13 = scmp.ne.s32.totalorder %s2432_s7, %s1845_s21  ;;  %p1852_p5 = scmp.lt.u32.totalorder %s1845_s21, %s2432_s7 }
  0x49   : > { %p1848_p1 = pnand %p1846_p13, %p2135_p0 }
  0x4b   : > { %p1849_p6 = pneg %p1848_p1 }
  0x4d   : > { %p1854_p9 = pnand %p1852_p5, %p1849_p6 }
  0x4f   : > { %1857 = shalt.err (!%p1854_p9)
}
  0x50   : > { %s1858_s24 = scalar_lea.vmem %s2125_s16, 16  ;;  %s1865_s13 = scalar_lea.vmem %s2125_s16, 32 }
  0x51   : > { %p1859_p10 = scmp.ne.s32.totalorder %s2125_s16, %s1858_s24  ;;  %p1866_p4 = scmp.lt.s32.totalorder %s2125_s16, %s2125_s16 }
  0x52   : > { %p1867_p7 = scmp.lt.s32.totalorder %s1865_s13, %s1858_s24 }
  0x53   : > { %p1861_p2 = pnand %p1859_p10, %p2135_p0 }
  0x54   : > { %p1868_p8 = por %p1867_p7, %p1866_p4 }
  0x55   : > { %p1862_p3 = pneg %p1861_p2 }
  0x57   : > { %p1869_p11 = pnand %p1868_p8, %p1862_p3 }
  0x59   : > { %1872 = shalt.err (!%p1869_p11)
}
  0x5a   : > { %1685 = dma.hbm_to_vmem [thread:$0]  (!%p2119_p12), %s2432_s7, 16, %s2125_s16, [#allocation8]  }
  0x5b   : > { %s1980_s19 = smov [#allocation10]   ;;  %s1873_s27 = scalar_lea.hbm %s2433_s8, 16 }
  0x5c   : > { %s396_s25 = sshll.u32 %s1980_s19, 4  ;;  %p1874_p13 = scmp.ne.s32.totalorder %s2433_s8, %s1873_s27  ;;  %s397_s25 = int_to_ptr.vmem [resolvable:$true] %s396_s25 }
  0x5d   : > { %p1880_p5 = scmp.lt.u32.totalorder %s1873_s27, %s2433_s8 }
  0x5e   : > { %p1876_p1 = pnand %p1874_p13, %p2135_p0 }
  0x60   : > { %p1877_p6 = pneg %p1876_p1 }
  0x62   : > { %p1882_p9 = pnand %p1880_p5, %p1877_p6 }
  0x64   : > { %1885 = shalt.err (!%p1882_p9)
}
  0x65   : > { %s1886_s16 = scalar_lea.vmem %s397_s25, 16  ;;  %s1893_s28 = scalar_lea.vmem %s397_s25, 32 }
  0x66   : > { %p1887_p10 = scmp.ne.s32.totalorder %s397_s25, %s1886_s16  ;;  %p1894_p4 = scmp.lt.s32.totalorder %s397_s25, %s397_s25 }
  0x67   : > { %p1895_p7 = scmp.lt.s32.totalorder %s1893_s28, %s1886_s16 }
  0x68   : > { %p1889_p2 = pnand %p1887_p10, %p2135_p0 }
  0x69   : > { %p1896_p8 = por %p1895_p7, %p1894_p4 }
  0x6a   : > { %p1890_p3 = pneg %p1889_p2 }
  0x6c   : > { %p1897_p11 = pnand %p1896_p8, %p1890_p3 }
  0x6e   : > { %1900 = shalt.err (!%p1897_p11)
}
  0x6f   : > { %1688 = dma.hbm_to_vmem [thread:$0]  (!%p2119_p12), %s2433_s8, 16, %s397_s25, [#allocation11]  }
  0x70   : > { %p2461_p13 = scmp.ne.s32.totalorder %s2458_s20, 0 }
  0x71   : > { %p2462_p1 = scmp.eq.s32.totalorder (!%p2461_p13), %s2083_s29, 0 }
  0x72   : > { %428 = sbr.rel (%p2461_p13) target bundleno = 2798 (0xaee), region = 72 }
  0x79   : > { %1946 = dma.done.wait (%p2462_p1), [#allocation5], 16   ;;  %p2463_p0 = pmov %p2462_p1 }
  0x7b   : > { %1948 = vsyncadd (%p2463_p0), [#allocation5], 4294967280  ;;  %p2464_p6 = pmov %p2463_p0 }
  0x7c   : > { %p2465_p5 = pmov %p2463_p0 }
  0x7d   : > { %1950 = dma.done.wait (%p2464_p6), [#allocation8], 32  }
  0x7e   : > { %1952 = vsyncadd (%p2465_p5), [#allocation8], 4294967264  ;;  %p2466_p9 = pmov %p2463_p0 }
  0x7f   : > { %p2467_p12 = pmov %p2463_p0 }
  0x80   : > { %1954 = dma.done.wait (%p2466_p9), [#allocation11], 16  }
  0x81   : > { %1956 = vsyncadd (%p2467_p12), [#allocation11], 4294967280  ;;  %p483_p10 = scmp.lt.s32.totalorder %s2083_s29, 1  ;;  %vm491_vm0 = vcmask 261120   ;;  %v1748_v7 = vld [vmem:[%s2428_s3] sm:$0xff]   ;;  %v1981_v8 = vmov 0.0  }
  0x82   : > { %1574 = vmatprep.subr.bf16.mxu0 %v1981_v8  ;;  %vm1982_vm1 = vmmov 0   ;;  %v1749_v9 = vld [vmem:[%s2428_s3 + $0x8] sm:$0xff]   ;;  %1582 = vmatprep.subr.bf16.mxu1 %v1981_v8  ;;  %v1493_v14 = vld [vmem:[%s2426_s1] ss:$0 sm:$0xff]  ;;  %v1495_v20 = vld [vmem:[#allocation4] ss:$0 sm:$0xff] }
  0x83   : > { %s484_s20 = scalar_select %p483_p10, %s2083_s29, 1  ;;  %1578 = vmatprep.mubr.msk.bf16.mxu0 %vm1982_vm1, %v1981_v8  ;;  %1575 = vmatpush3.bf16.msra.mxu0 %v1748_v7  ;;  %v1494_v16 = vld [vmem:[%s2427_s2] ss:$0 sm:$0xff]  ;;  %vm589_vm2 = vcmask 257024   ;;  %vm608_vm3 = vcmask 64512   ;;  %vm670_vm4 = vcmask 1043456  }
  0x84   : > { %1576 = vmatprep.subr.bf16.mxu0 %v1981_v8  ;;  %1584 = vmatprep.mubr.msk.bf16.mxu1 %vm1982_vm1, %v1981_v8  ;;  %s1983_s17 = smov 96   ;;  %s1984_s19 = smov 120   ;;  %vm715_vm5 = vcmask 60416   ;;  %vm846_vm6 = vcmask 126016   ;;  %vm977_vm7 = vcmask 191616   ;;  %vm1108_vm8 = vcmask 257216  }
  0x85   : > { %s1492_s30 = sshll.u32 %s484_s20, 3  ;;  %s1985_s20 = smov 112   ;;  %vm1319_vm9 = vcmask 523264  }
  0x86   : > { %s486_s21 = scalar_lea.vmem %s2425_s0, %s1492_s30  ;;  %s1986_s30 = smov 104  }
  0x87   : > { %v2236_v0 = vld [vmem:[%s486_s21] sm:$0xff]  ;;  %1577 = vmatpush3.bf16.msra.mxu0 %v1749_v9  ;;  %s1987_s23 = smov 64   ;;  %s1988_s25 = smov 8  }
  0x88   : > { %v492_v1 = vsel %vm491_vm0, %v2236_v0, 0.0  ;;  %1588 = vmatprep.subr.bf16.mxu0 %v1981_v8  ;;  %s1989_s22 = smov 16   ;;  %s1990_s24 = smov 24  }
  0x89   : > { %493 = vadd.xlane.f32.xlu0 %v492_v1  ;;  %p2470_p3 = scmp.ne.s32.totalorder %s2455_s18, 0  ;;  %s1991_s14 = smov [#allocation12]  }
 0x116   : > { %v494_v2 = vpop.xlane.xlu0 %493 }
 0x117   : > { %v496_v3 = vmul.f32 0.03125, %v494_v2 }
 0x119   : > { %v497_v4 = vsub.f32 %v2236_v0, %v496_v3 }
 0x11b   : > { %v498_v5 = vmul.f32 %v497_v4, %v497_v4 }
 0x11d   : > { %v499_v6 = vsel %vm491_vm0, %v498_v5, 0.0 }
 0x11e   : > { %500 = vadd.xlane.f32.xlu0 %v499_v6 }
 0x1ab   : > { %v501_v10 = vpop.xlane.xlu0 %500 }
 0x1ac   : > { %v502_v11 = vmul.f32 0.03125, %v501_v10 }
 0x1ae   : > { %v503_v12 = vadd.f32 1e-05, %v502_v11 }
 0x1b0   : > { %1767 = vrsqrt.f32 %v503_v12 }
 0x1ba   : > { %v1768_v13 = vpop.eup %1767 }
 0x1bb   : > { %v505_v15 = vmul.f32 %v1768_v13, %v497_v4 }
 0x1bd   : > { %v512_v17 = vmul.f32 %v1493_v14, %v505_v15 }
 0x1bf   : > { %v519_v18 = vadd.f32 %v1494_v16, %v512_v17 }
 0x1c1   : > { %v520_v19 = vpack.c.bf16 %v519_v18, %v519_v18 }
 0x1c3   : > { %1579 = vmatmul.mubr.msk.bf16.vlgmr.msra.gmra.mrb[0].mxu0 %vm491_vm0, %v520_v19 }
 0x1c4   : > { %1590 = vmatprep.mubr.msk.bf16.mxu0 %vm1982_vm1, %v1981_v8 }
 0x296   : > { %v581_v21 = vpop.f32.mrb[0].mxu0 }
 0x297   : > { %v582_v22 = vadd.f32 %v1495_v20, %v581_v21  ;;  %v1580_v23 = vpop.f32.mrb[1].mxu0 }
 0x298   : > { %v584_v24 = vpop.f32.mrb[2].mxu0 }
 0x299   : > { %v587_v25 = vmul.f32 0.35355338, %v582_v22  ;;  %v1581_v26 = vpop.f32.mrb[3].mxu0  ;;  %v2265_v27 = vpack.c.bf16 %v582_v22, %v582_v22 }
 0x29b   : > { %v588_v28 = vpack.c.bf16 %v587_v25, %v587_v25  ;;  %595 = vrot.lane.b32.xlu1 %v2265_v27, %s1983_s17  ;;  %s1537_s17 = sshll.u32 %s2083_s29, 7 }
 0x29d   : > { %590 = vst.msk [vmem:[#allocation2] sm:$0xf] %vm589_vm2, %v588_v28 }
 0x2a4   : > { %v1750_v29 = vld [vmem:[#allocation2] ss:$0 sps:$4 sm:$0xff]  }
 0x2a5   : > { %723 = vrot.lane.b32.xlu0 %v1750_v29, %s1984_s19  ;;  %v605_v35 = vld [vmem:[#allocation2] sm:$0xf] }
 0x2a6   : > { %v1753_v36 = vld [vmem:[#allocation2] ss:$0 sps:$4 sm:$0xff]  }
 0x2a7   : > { %v1755_v38 = vld [vmem:[#allocation2] ss:$0 sps:$4 sm:$0xff]  }
 0x30d   : > { %v596_v30 = vpop.permute.xlu1 %595 }
 0x30e   : > { %599 = vst.msk [vmem:[#allocation2 + $0x4] sm:$0xf] %vm589_vm2, %v596_v30 }
 0x315   : > { %v606_v31 = vld [vmem:[#allocation2 + $0x4] sm:$0xf] }
 0x316   : > { %v1751_v32 = vld [vmem:[#allocation2 + $0x4] ss:$0 sps:$4 sm:$0xff]   ;;  %v613_v33 = vsel %vm608_vm3, %v606_v31, 0 }
 0x317   : > { %1583 = vmatpush3.bf16.xpose.msra.mxu1 %v613_v33  ;;  %728 = vrot.lane.b32.xlu1 %v1751_v32, %s1984_s19  ;;  %v1752_v34 = vld [vmem:[#allocation2 + $0x4] ss:$0 sps:$4 sm:$0xff]   ;;  %v724_v42 = vpop.permute.xlu0 %723 }
 0x318   : > { %1594 = vmatprep.subr.bf16.mxu1 %v1981_v8  ;;  %v1754_v37 = vld [vmem:[#allocation2 + $0x4] ss:$0 sps:$4 sm:$0xff]  }
 0x31b   : > { %859 = vrot.lane.b32.xlu1 %v1752_v34, %s1985_s20 }
 0x31e   : > { %1585 = vmatmul.mubr.msk.bf16.vlgmr.msra.gmra.mrb[0].mxu1 %vm608_vm3, %v605_v35 }
 0x31f   : > { %854 = vrot.lane.b32.xlu1 %v1753_v36, %s1985_s20  ;;  %1596 = vmatprep.mubr.msk.bf16.mxu1 %vm1982_vm1, %v1981_v8 }
 0x323   : > { %990 = vrot.lane.b32.xlu1 %v1754_v37, %s1986_s30 }
 0x327   : > { %985 = vrot.lane.b32.xlu1 %v1755_v38, %s1986_s30 }
 0x389   : > { %v729_v39 = vpop.permute.xlu1 %728 }
 0x38a   : > { %v734_v40 = vsel %vm608_vm3, %v729_v39, 0 }
 0x38b   : > { %1595 = vmatpush3.bf16.xpose.msra.mxu1 %v734_v40 }
 0x38c   : > { %1606 = vmatprep.subr.bf16.mxu1 %v1981_v8 }
 0x38d   : > { %v860_v41 = vpop.permute.xlu1 %859 }
 0x38e   : > { %v865_v44 = vsel %vm608_vm3, %v860_v41, 0 }
 0x391   : > { %v855_v43 = vpop.permute.xlu1 %854 }
 0x392   : > { %1597 = vmatmul.mubr.msk.bf16.vlgmr.msra.gmra.mrb[4].mxu1 %vm608_vm3, %v724_v42 }
 0x393   : > { %1607 = vmatpush3.bf16.xpose.msra.mxu1 %v865_v44  ;;  %1608 = vmatprep.mubr.msk.bf16.mxu1 %vm1982_vm1, %v1981_v8 }
 0x394   : > { %1618 = vmatprep.subr.bf16.mxu1 %v1981_v8 }
 0x395   : > { %v991_v45 = vpop.permute.xlu1 %990 }
 0x396   : > { %v996_v46 = vsel %vm608_vm3, %v991_v45, 0 }
 0x399   : > { %v986_v47 = vpop.permute.xlu1 %985 }
 0x39a   : > { %1609 = vmatmul.mubr.msk.bf16.vlgmr.msra.gmra.mrb[8].mxu1 %vm608_vm3, %v855_v43 }
 0x39b   : > { %1619 = vmatpush3.bf16.xpose.msra.mxu1 %v996_v46  ;;  %1620 = vmatprep.mubr.msk.bf16.mxu1 %vm1982_vm1, %v1981_v8 }
 0x39c   : > { %1630 = vmatprep.subr.bf16.mxu1 %v1981_v8 }
 0x3a2   : > { %1621 = vmatmul.mubr.msk.bf16.vlgmr.msra.gmra.mrb[12].mxu1 %vm608_vm3, %v986_v47 }
 0x3a3   : > { %1634 = vmatprep.mubr.msk.bf16.mxu1 %vm1982_vm1, %v1981_v8 }
 0x3f1   : > { %v649_v48 = vpop.f32.mrb[0].mxu1 }
 0x3f2   : > { %v1586_v49 = vpop.f32.mrb[1].mxu1  ;;  %v655_v50 = vsel %vm608_vm3, %v649_v48, -inf }
 0x3f3   : > { %656 = vmax.xlane.f32.xlu1 %v655_v50  ;;  %v652_v51 = vpop.f32.mrb[2].mxu1 }
 0x3f4   : > { %v1587_v52 = vpop.f32.mrb[3].mxu1 }
 0x465   : > { %v770_v53 = vpop.f32.mrb[4].mxu1 }
 0x466   : > { %v1598_v54 = vpop.f32.mrb[5].mxu1  ;;  %v776_v55 = vsel %vm608_vm3, %v770_v53, -inf }
 0x467   : > { %777 = vmax.xlane.f32.xlu0 %v776_v55  ;;  %v773_v56 = vpop.f32.mrb[6].mxu1 }
 0x468   : > { %v1599_v57 = vpop.f32.mrb[7].mxu1 }
 0x46d   : > { %v901_v58 = vpop.f32.mrb[8].mxu1 }
 0x46e   : > { %v1610_v59 = vpop.f32.mrb[9].mxu1  ;;  %v907_v60 = vsel %vm608_vm3, %v901_v58, -inf }
 0x46f   : > { %908 = vmax.xlane.f32.xlu1 %v907_v60  ;;  %v904_v61 = vpop.f32.mrb[10].mxu1 }
 0x470   : > { %v1611_v62 = vpop.f32.mrb[11].mxu1 }
 0x475   : > { %v1032_v63 = vpop.f32.mrb[12].mxu1 }
 0x476   : > { %v1622_v1 = vpop.f32.mrb[13].mxu1  ;;  %v1038_v2 = vsel %vm608_vm3, %v1032_v63, -inf }
 0x477   : > { %1039 = vmax.xlane.f32.xlu0 %v1038_v2  ;;  %v1035_v3 = vpop.f32.mrb[14].mxu1  ;;  %v1759_v1 = vld [vmem:[%s2430_s5] sm:$0xff]  }
 0x478   : > { %v1623_v4 = vpop.f32.mrb[15].mxu1  ;;  %1631 = vmatpush3.bf16.msra.mxu1 %v1759_v1  ;;  %v1760_v3 = vld [vmem:[%s2430_s5 + $0x8] sm:$0xff]  }
 0x479   : > { %1632 = vmatprep.subr.bf16.mxu1 %v1981_v8 }
 0x47c   : > { %1633 = vmatpush3.bf16.msra.mxu1 %v1760_v3 }
 0x47d   : > { %1646 = vmatprep.subr.bf16.mxu1 %v1981_v8 }
 0x480   : > { %v657_v5 = vpop.xlane.xlu1 %656  ;;  %600 = vrot.lane.b32.xlu1 %v2265_v27, %s1987_s23 }
 0x481   : > { %v658_v6 = vsub.f32 %v649_v48, %v657_v5 }
 0x483   : > { %v659_v7 = vmul.f32 1.442695, %v658_v6 }
 0x485   : > { %1769 = vpow2.f32 %v659_v7 }
 0x48f   : > { %v1770_v9 = vpop.eup %1769 }
 0x490   : > { %v661_v10 = vsel %vm608_vm3, %v1770_v9, 0.0 }
 0x491   : > { %662 = vadd.xlane.f32.xlu0 %v661_v10 }
 0x4f4   : > { %v778_v11 = vpop.xlane.xlu0 %777 }
 0x4f5   : > { %v779_v12 = vsub.f32 %v770_v53, %v778_v11 }
 0x4f7   : > { %v780_v13 = vmul.f32 1.442695, %v779_v12 }
 0x4f9   : > { %1771 = vpow2.f32 %v780_v13 }
 0x4fc   : > { %v909_v14 = vpop.xlane.xlu1 %908 }
 0x4fd   : > { %v910_v15 = vsub.f32 %v901_v58, %v909_v14 }
 0x4ff   : > { %v911_v16 = vmul.f32 1.442695, %v910_v15 }
 0x500   : > { %v601_v17 = vpop.permute.xlu1 %600 }
 0x501   : > { %1773 = vpow2.f32 %v911_v16  ;;  %604 = vst.msk [vmem:[#allocation2 + $0x8] sm:$0xf] %vm589_vm2, %v601_v17 }
 0x503   : > { %v1772_v18 = vpop.eup %1771 }
 0x504   : > { %v1040_v19 = vpop.xlane.xlu0 %1039  ;;  %v782_v20 = vsel %vm608_vm3, %v1772_v18, 0.0 }
 0x505   : > { %v1041_v21 = vsub.f32 %v1032_v63, %v1040_v19  ;;  %783 = vadd.xlane.f32.xlu0 %v782_v20 }
 0x507   : > { %v1042_v22 = vmul.f32 1.442695, %v1041_v21 }
 0x508   : > { %v607_v23 = vld [vmem:[#allocation2 + $0x8] sm:$0xf] }
 0x509   : > { %v1756_v24 = vld [vmem:[#allocation2 + $0x8] ss:$0 sps:$4 sm:$0xff]   ;;  %1775 = vpow2.f32 %v1042_v22  ;;  %v672_v25 = vsel %vm670_vm4, %v607_v23, 0 }
 0x50a   : > { %1589 = vmatpush3.bf16.msra.mxu0 %v672_v25  ;;  %922 = vrot.lane.b32.xlu1 %v1756_v24, %s1985_s20  ;;  %v1757_v28 = vld [vmem:[#allocation2 + $0x8] ss:$0 sps:$4 sm:$0xff]  }
 0x50b   : > { %v1774_v26 = vpop.eup %1773  ;;  %1600 = vmatprep.subr.bf16.mxu0 %v1981_v8  ;;  %v1758_v33 = vld [vmem:[#allocation2 + $0x8] ss:$0 sps:$4 sm:$0xff]  }
 0x50c   : > { %v913_v27 = vsel %vm608_vm3, %v1774_v26, 0.0 }
 0x50d   : > { %914 = vadd.xlane.f32.xlu0 %v913_v27 }
 0x50e   : > { %1053 = vrot.lane.b32.xlu1 %v1757_v28, %s1986_s30 }
 0x513   : > { %v1776_v29 = vpop.eup %1775 }
 0x514   : > { %v1044_v30 = vsel %vm608_vm3, %v1776_v29, 0.0 }
 0x515   : > { %1045 = vadd.xlane.f32.xlu0 %v1044_v30 }
 0x51e   : > { %v663_v31 = vpop.xlane.xlu0 %662 }
 0x51f   : > { %1777 = vrcp.f32 %v663_v31  ;;  %v1761_v31 = vld [vmem:[%s2434_s9] sm:$0xff]  }
 0x529   : > { %v1778_v32 = vpop.eup %1777 }
 0x52a   : > { %v665_v34 = vmul.f32 %v1778_v32, %v1770_v9 }
 0x52b   : > { %791 = vrot.lane.b32.xlu0 %v1758_v33, %s1984_s19 }
 0x52c   : > { %v666_v35 = vpack.c.bf16 %v665_v34, %v665_v34 }
 0x52e   : > { %1591 = vmatmul.mubr.msk.bf16.vlgmr.msra.gmra.mrb[4].mxu0 %vm608_vm3, %v666_v35 }
 0x52f   : > { %1602 = vmatprep.mubr.msk.bf16.mxu0 %vm1982_vm1, %v1981_v8 }
 0x57c   : > { %v923_v43 = vpop.permute.xlu1 %922 }
 0x57d   : > { %v928_v46 = vsel %vm670_vm4, %v923_v43, 0  ;;  %v1764_v43 = vld [vmem:[%s2436_s11 + $0x8] sm:$0xff]  }
 0x580   : > { %v1054_v48 = vpop.permute.xlu1 %1053 }
 0x581   : > { %v1059_v51 = vsel %vm670_vm4, %v1054_v48, 0 }
 0x592   : > { %v784_v36 = vpop.xlane.xlu0 %783 }
 0x593   : > { %1779 = vrcp.f32 %v784_v36  ;;  %v1524_v36 = vld [vmem:[#allocation9] ss:$0 sm:$0xff] }
 0x59a   : > { %v915_v37 = vpop.xlane.xlu0 %914 }
 0x59b   : > { %1781 = vrcp.f32 %v915_v37 }
 0x59d   : > { %v1780_v38 = vpop.eup %1779 }
 0x59e   : > { %v786_v40 = vmul.f32 %v1780_v38, %v1772_v18  ;;  %v1520_v18 = vld [vmem:[#allocation7] ss:$0 sm:$0xff]  ;;  %v1525_v38 = vld [vmem:[#allocation10] ss:$0 sm:$0xff] }
 0x5a0   : > { %v787_v44 = vpack.c.bf16 %v786_v40, %v786_v40 }
 0x5a2   : > { %v1046_v39 = vpop.xlane.xlu0 %1045 }
 0x5a3   : > { %1783 = vrcp.f32 %v1046_v39 }
 0x5a5   : > { %v1782_v45 = vpop.eup %1781 }
 0x5a6   : > { %v792_v41 = vpop.permute.xlu0 %791  ;;  %v917_v47 = vmul.f32 %v1782_v45, %v1774_v26  ;;  %v1766_v45 = vld [vmem:[%s2436_s11 + $0x18] sm:$0xff]  }
 0x5a7   : > { %v797_v42 = vsel %vm670_vm4, %v792_v41, 0 }
 0x5a8   : > { %1601 = vmatpush3.bf16.msra.mxu0 %v797_v42  ;;  %v918_v49 = vpack.c.bf16 %v917_v47, %v917_v47  ;;  %v1763_v42 = vld [vmem:[%s2436_s11] sm:$0xff]  }
 0x5a9   : > { %1612 = vmatprep.subr.bf16.mxu0 %v1981_v8 }
 0x5ab   : > { %1603 = vmatmul.mubr.msk.bf16.vlgmr.msra.gmra.mrb[8].mxu0 %vm608_vm3, %v787_v44  ;;  %v1765_v44 = vld [vmem:[%s2436_s11 + $0x10] sm:$0xff]  }
 0x5ac   : > { %1613 = vmatpush3.bf16.msra.mxu0 %v928_v46  ;;  %1614 = vmatprep.mubr.msk.bf16.mxu0 %vm1982_vm1, %v1981_v8  ;;  %v1526_v46 = vld [vmem:[%s2435_s10] ss:$0 sm:$0xff] }
 0x5ad   : > { %1624 = vmatprep.subr.bf16.mxu0 %v1981_v8  ;;  %v1784_v50 = vpop.eup %1783 }
 0x5ae   : > { %v1048_v52 = vmul.f32 %v1784_v50, %v1776_v29 }
 0x5b0   : > { %v1049_v53 = vpack.c.bf16 %v1048_v52, %v1048_v52 }
 0x5b3   : > { %1615 = vmatmul.mubr.msk.bf16.vlgmr.msra.gmra.mrb[12].mxu0 %vm608_vm3, %v918_v49 }
 0x5b4   : > { %1625 = vmatpush3.bf16.msra.mxu0 %v1059_v51  ;;  %1626 = vmatprep.mubr.msk.bf16.mxu0 %vm1982_vm1, %v1981_v8 }
 0x5b5   : > { %1638 = vmatprep.subr.bf16.mxu0 %v1981_v8 }
 0x5bb   : > { %1627 = vmatmul.mubr.msk.bf16.vlgmr.msra.gmra.mrb[16].mxu0 %vm608_vm3, %v1049_v53 }
 0x5bc   : > { %1642 = vmatprep.mubr.msk.bf16.mxu0 %vm1982_vm1, %v1981_v8  ;;  %1639 = vmatpush3.bf16.msra.mxu0 %v1761_v31 }
 0x5bd   : > { %1640 = vmatprep.subr.bf16.mxu0 %v1981_v8 }
 0x601   : > { %v708_v54 = vpop.f32.mrb[4].mxu0 }
 0x602   : > { %v714_v55 = vpack.c.bf16 %v708_v54, %v708_v54  ;;  %v1592_v56 = vpop.f32.mrb[5].mxu0 }
 0x603   : > { %v711_v57 = vpop.f32.mrb[6].mxu0 }
 0x604   : > { %716 = vst.msk [vmem:[#allocation3] sm:$0xf] %vm715_vm5, %v714_v55  ;;  %v1593_v58 = vpop.f32.mrb[7].mxu0  ;;  %v1530_v57 = vld [vmem:[%s2437_s12] ss:$0 sm:$0xff] }
 0x67e   : > { %v833_v59 = vpop.f32.mrb[8].mxu0 }
 0x67f   : > { %v1541_v60 = vpack.c.bf16 %v833_v59, %v833_v59  ;;  %v1604_v61 = vpop.f32.mrb[9].mxu0 }
 0x680   : > { %v836_v62 = vpop.f32.mrb[10].mxu0 }
 0x681   : > { %843 = vrot.lane.b32.xlu1 %v1541_v60, %s1988_s25  ;;  %v1605_v63 = vpop.f32.mrb[11].mxu0  ;;  %s2468_s25 = sld [smem:[#allocation23_spill]] }
 0x686   : > { %v964_v2 = vpop.f32.mrb[12].mxu0 }
 0x687   : > { %v1542_v4 = vpack.c.bf16 %v964_v2, %v964_v2  ;;  %v1616_v5 = vpop.f32.mrb[13].mxu0  ;;  %s2469_s21 = smov %s2468_s25  ;;  %s2382_s15 = scalar_lea.hbm %s2468_s25, %s1537_s17 }
 0x688   : > { %v967_v6 = vpop.f32.mrb[14].mxu0 }
 0x689   : > { %974 = vrot.lane.b32.xlu1 %v1542_v4, %s1989_s22  ;;  %v1617_v7 = vpop.f32.mrb[15].mxu0  ;;  %s1905_s22 = sshll.u32 %s1991_s14, 4  ;;  %s1906_s22 = int_to_ptr.vmem [resolvable:$false] %s1905_s22 }
 0x68e   : > { %v1095_v9 = vpop.f32.mrb[16].mxu0 }
 0x68f   : > { %v1543_v10 = vpack.c.bf16 %v1095_v9, %v1095_v9  ;;  %v1628_v11 = vpop.f32.mrb[17].mxu0 }
 0x690   : > { %v1098_v12 = vpop.f32.mrb[18].mxu0 }
 0x691   : > { %1105 = vrot.lane.b32.xlu1 %v1543_v10, %s1990_s24  ;;  %v1629_v13 = vpop.f32.mrb[19].mxu0  ;;  %s480_s24 = sand.u32 1, %s1967_s26  }
 0x692   : > { %s1491_s13 = sshll.u32 %s480_s24, 3  ;;  %s1366_s29 = scalar_lea.sflag [#allocation6], %s480_s24 }
 0x693   : > { %s482_s19 = scalar_lea.vmem [#allocation12], %s1491_s13  ;;  %s1907_s13 = scalar_lea.vmem %s1906_s22, 256 }
 0x694   : > { %s1379_s20 = sshll.u32 %s482_s19, 4  ;;  %s2384_s20 = int_to_ptr.vmem [resolvable:$true] %s1379_s20 }
 0x695   : > { %s1901_s27 = scalar_lea.vmem %s2384_s20, 128  ;;  %p1908_p8 = scmp.lt.s32.totalorder %s2384_s20, %s1906_s22 }
 0x696   : > { %p1902_p2 = scmp.ne.s32.totalorder %s2384_s20, %s1901_s27  ;;  %p1909_p11 = scmp.lt.s32.totalorder %s1907_s13, %s1901_s27 }
 0x698   : > { %p1903_p4 = pnand %p1902_p2, %p2470_p3  ;;  %p1910_p13 = por %p1909_p11, %p1908_p8 }
 0x69a   : > { %p1904_p7 = pneg %p1903_p4 }
 0x69c   : > { %p1911_p1 = pnand %p1910_p13, %p1904_p7 }
 0x6f3   : > { %v844_v14 = vpop.permute.xlu1 %843 }
 0x6f4   : > { %847 = vst.msk [vmem:[#allocation3] sm:$0xf] %vm846_vm6, %v844_v14 }
 0x6fb   : > { %v975_v15 = vpop.permute.xlu1 %974 }
 0x6fc   : > { %978 = vst.msk [vmem:[#allocation3] sm:$0xf] %vm977_vm7, %v975_v15 }
 0x703   : > { %v1106_v16 = vpop.permute.xlu1 %1105 }
 0x704   : > { %1109 = vst.msk [vmem:[#allocation3] sm:$0xf] %vm1108_vm8, %v1106_v16 }
 0x70b   : > { %v1110_v17 = vld [vmem:[#allocation3] sm:$0xf] }
 0x70c   : > { %1635 = vmatmul.mubr.msk.bf16.vlgmr.msra.gmra.mrb[16].mxu1 %vm491_vm0, %v1110_v17 }
 0x70d   : > { %1654 = vmatprep.mubr.msk.bf16.mxu1 %vm1982_vm1, %v1981_v8  ;;  %1647 = vmatpush3.bf16.msra.mxu1 %v1763_v42 }
 0x70e   : > { %1648 = vmatprep.subr.bf16.mxu1 %v1981_v8 }
 0x711   : > { %1649 = vmatpush3.bf16.msra.mxu1 %v1764_v43 }
 0x712   : > { %1650 = vmatprep.subr.bf16.mxu1 %v1981_v8 }
 0x715   : > { %1651 = vmatpush3.bf16.msra.mxu1 %v1765_v44 }
 0x716   : > { %1652 = vmatprep.subr.bf16.mxu1 %v1981_v8 }
 0x719   : > { %1653 = vmatpush3.bf16.msra.mxu1 %v1766_v45 }
 0x7df   : > { %v1171_v19 = vpop.f32.mrb[16].mxu1 }
 0x7e0   : > { %v1172_v20 = vadd.f32 %v1520_v18, %v1171_v19  ;;  %v1636_v21 = vpop.f32.mrb[17].mxu1 }
 0x7e1   : > { %v1174_v22 = vpop.f32.mrb[18].mxu1 }
 0x7e2   : > { %v2341_v23 = vadd.f32 %v1172_v20, %v2236_v0  ;;  %v1637_v24 = vpop.f32.mrb[19].mxu1  ;;  %v1762_v0 = vld [vmem:[%s2434_s9 + $0x8] sm:$0xff]  }
 0x7e3   : > { %1641 = vmatpush3.bf16.msra.mxu0 %v1762_v0 }
 0x7e4   : > { %v1180_v25 = vsel %vm491_vm0, %v2341_v23, 0.0 }
 0x7e5   : > { %1181 = vadd.xlane.f32.xlu1 %v1180_v25 }
 0x872   : > { %v1182_v26 = vpop.xlane.xlu1 %1181 }
 0x873   : > { %v1183_v27 = vmul.f32 0.03125, %v1182_v26 }
 0x875   : > { %v1184_v28 = vsub.f32 %v2341_v23, %v1183_v27 }
 0x877   : > { %v1185_v29 = vmul.f32 %v1184_v28, %v1184_v28 }
 0x879   : > { %v1186_v30 = vsel %vm491_vm0, %v1185_v29, 0.0 }
 0x87a   : > { %1187 = vadd.xlane.f32.xlu0 %v1186_v30 }
 0x907   : > { %v1188_v32 = vpop.xlane.xlu0 %1187 }
 0x908   : > { %v1189_v33 = vmul.f32 0.03125, %v1188_v32 }
 0x90a   : > { %v1190_v34 = vadd.f32 1e-05, %v1189_v33 }
 0x90c   : > { %1785 = vrsqrt.f32 %v1190_v34 }
 0x916   : > { %v1786_v35 = vpop.eup %1785 }
 0x917   : > { %v1192_v37 = vmul.f32 %v1786_v35, %v1184_v28 }
 0x919   : > { %v1199_v39 = vmul.f32 %v1524_v36, %v1192_v37 }
 0x91b   : > { %v1206_v40 = vadd.f32 %v1525_v38, %v1199_v39 }
 0x91d   : > { %v1207_v41 = vpack.c.bf16 %v1206_v40, %v1206_v40 }
 0x91f   : > { %1643 = vmatmul.mubr.msk.bf16.vlgmr.msra.gmra.mrb[20].mxu0 %vm491_vm0, %v1207_v41 }
 0x9f2   : > { %v1268_v47 = vpop.f32.mrb[20].mxu0 }
 0x9f3   : > { %v1269_v48 = vadd.f32 %v1526_v46, %v1268_v47  ;;  %v1644_v49 = vpop.f32.mrb[21].mxu0 }
 0x9f4   : > { %v1271_v50 = vpop.f32.mrb[22].mxu0 }
 0x9f5   : > { %v1275_v51 = vmul.f32 0.70710677, %v1269_v48  ;;  %v1645_v52 = vpop.f32.mrb[23].mxu0  ;;  %v1274_v8 = vmul.f32 0.5, %v1269_v48 }
 0x9f7   : > { %1787 = verf.f32 %v1275_v51 }
 0xa01   : > { %v1788_v53 = vpop.eup %1787 }
 0xa02   : > { %v1277_v54 = vadd.f32 1.0, %v1788_v53 }
 0xa04   : > { %v1278_v55 = vmul.f32 %v1277_v54, %v1274_v8 }
 0xa06   : > { %v1279_v56 = vpack.c.bf16 %v1278_v55, %v1278_v55 }
 0xa08   : > { %1655 = vmatmul.mubr.msk.bf16.vlgmr.msra.gmra.mrb[20].mxu1 %vm1319_vm9, %v1279_v56 }
 0xadb   : > { %v1357_v58 = vpop.f32.mrb[20].mxu1 }
 0xadc   : > { %v1358_v59 = vadd.f32 %v1530_v57, %v1357_v58  ;;  %v1656_v60 = vpop.f32.mrb[21].mxu1 }
 0xadd   : > { %v1360_v61 = vpop.f32.mrb[22].mxu1 }
 0xade   : > { %v1363_v62 = vadd.f32 %v1358_v59, %v2341_v23  ;;  %v1657_v63 = vpop.f32.mrb[23].mxu1 }
 0xae0   : > { %1364 = vst.msk [vmem:[%s482_s19] sm:$0xff] %vm491_vm0, %v1363_v62 }
 0xae1   : > { %1914 = shalt.err (!%p1911_p1)
}
 0xae2   : > { %s1915_s24 = scalar_lea.hbm %s2382_s15, 128  ;;  %s1919_s17 = scalar_lea.hbm %s2469_s21, 256 }
 0xae3   : > { %p1916_p0 = scmp.ne.s32.totalorder %s2382_s15, %s1915_s24  ;;  %p1920_p9 = scmp.lt.u32.totalorder %s2382_s15, %s2469_s21 }
 0xae4   : > { %p1921_p12 = scmp.lt.u32.totalorder %s1919_s17, %s1915_s24  ;;  %p1923_p2 = scmp.lt.u32.totalorder %s1915_s24, %s2382_s15 }
 0xae5   : > { %p1917_p6 = pnand %p1916_p0, %p2470_p3 }
 0xae6   : > { %p1922_p10 = por %p1921_p12, %p1920_p9 }
 0xae7   : > { %p1918_p5 = pneg %p1917_p6 }
 0xae8   : > { %p1924_p4 = por %p1923_p2, %p1922_p10 }
 0xaea   : > { %p1925_p7 = pnand %p1924_p4, %p1918_p5 }
 0xaec   : > { %1928 = shalt.err (!%p1925_p7)
}
 0xaed   : > { %1674 = dma.vmem_to_hbm [thread:$0]  (%p2470_p3), %s2384_s20, 128, %s2382_s15, %s1366_s29  }
 0xaee PF: > { %s2471_s23 = sld [smem:[#allocation19_spill]]  ;;  %s2472_s25 = sld [smem:[#allocation17_spill]] }
 0xaef   : > { %s2473_s27 = sld [smem:[#allocation22_spill]] }
 0xaf4   : > { %p1701_p8 = scmp.ge.s32.totalorder %s2471_s23, 2  ;;  %s1391_s14 = sand.u32 1, %s2472_s25  }
 0xaf5   : > { %p2474_p11 = scmp.ne.s32.totalorder %s2473_s27, 0  ;;  %s1392_s22 = scalar_lea.sflag [#allocation6], %s1391_s14 }
 0xaf7   : > { %p1690_p13 = pnand %p1701_p8, %p2474_p11 }
 0xaf9   : > { %1958 = dma.done.wait (!%p1690_p13), %s1392_s22, 128  }
 0xafa   : > { %1960 = vsyncadd (!%p1690_p13), %s1392_s22, 4294967168  ;;  %s2475_s28 = sld [smem:[#allocation20_spill]]  ;;  %s2476_s13 = sld [smem:[#allocation18_spill]] }
 0xafb   : > { %s2477_s27 = sld [smem:[#allocation21_spill]]  ;;  %s2478_s25 = smov %s1967_s26 }
 0xb00   : > { %p26_p1 = scmp.ge.s32.totalorder %s2475_s28, 4   ;;  %s2479_s26 = smov %s2476_s13 }
 0xb02   :  { %28 = sbr.rel (!%p26_p1) target bundleno = 8 (0x8), region = 126 }
 0xb09   :  { %1397 = vsyncpa [#allocation5], 1 }
 0xb0a   :  { %1399 = vsyncpa [#allocation5 + $0x1], 1 }
 0xb0b   :  { %1400 = vsyncpa [#allocation8], 1 }
 0xb0c   :  { %1401 = vsyncpa [#allocation11], 1 }
 0xb0d   :  { %1402 = vsyncpa [#allocation6], 1 }
 0xb0e   :  { %1404 = vsyncpa [#allocation6 + $0x1], 1 }

// kernel: tpu_custom_call.1
= control target key start
LH: loop header
LB: loop body
LE: loop exit
PB: predicated region body
PF: predicated region fallthrough
CT: control target
= control target key end

     0   :  { %s2425_s0 = inlined_call_operand.vmem [shape: f32[2,8,32], index: 0, kind: input, shape index: {}]   ;;  %s2426_s1 = inlined_call_operand.vmem [shape: f32[1,32], index: 1, kind: input, shape index: {}]   ;;  %s2427_s2 = inlined_call_operand.vmem [shape: f32[1,32], index: 2, kind: input, shape index: {}]   ;;  %s2428_s3 = inlined_call_operand.vmem [shape: bf16[32,96], index: 3, kind: input, shape index: {}]   ;;  %s2429_s4 = inlined_call_operand.hbm [shape: f32[1,96], index: 4, kind: input, shape index: {}]   ;;  %s2430_s5 = inlined_call_operand.vmem [shape: bf16[32,32], index: 5, kind: input, shape index: {}]   ;;  %s2431_s6 = inlined_call_operand.hbm [shape: f32[1,32], index: 6, kind: input, shape index: {}]   ;;  %s2432_s7 = inlined_call_operand.hbm [shape: f32[1,32], index: 7, kind: input, shape index: {}]   ;;  %s2433_s8 = inlined_call_operand.hbm [shape: f32[1,32], index: 8, kind: input, shape index: {}]   ;;  %s2434_s9 = inlined_call_operand.vmem [shape: bf16[32,64], index: 9, kind: input, shape index: {}]   ;;  %s2435_s10 = inlined_call_operand.vmem [shape: f32[1,64], index: 10, kind: input, shape index: {}]   ;;  %s2436_s11 = inlined_call_operand.vmem [shape: bf16[64,32], index: 11, kind: input, shape index: {}]   ;;  %s2437_s12 = inlined_call_operand.vmem [shape: f32[1,32], index: 12, kind: input, shape index: {}]   ;;  %s2438_s13 = inlined_call_operand.hbm [shape: f32[2,8,32], index: 13, kind: output, shape index: {}]  }
   0x1   :  { %2449 = sst [smem:[#allocation23_spill]] %s2438_s13 }
   0x2   :  { %18 = vsyncpa [#allocation5], 0 }
   0x3   :  { %19 = vsyncpa [#allocation8], 0 }
   0x4   :  { %20 = vsyncpa [#allocation11], 0 }
   0x5   :  { %21 = vsyncpa [#allocation6], 0 }
   0x6   :  { %23 = vsyncpa [#allocation6 + $0x1], 0  ;;  %s2062_s25 = smov 0   ;;  %s2064_s26 = smov 0  }
   0x7   :  { %s2066_s27 = smov 0   ;;  %s2068_s28 = smov 0  }
   0x8 LB: > { %2450 = sst [smem:[#allocation17_spill]] %s1963_s25  ;;  %s2083_s29 = sadd.s32 4294967295, %s1975_s28   ;;  %s1975_s28 = sphi %s2068_s28, %s2475_s28   ;;  %s1971_s27 = sphi %s2066_s27, %s2477_s27   ;;  %s1967_s26 = sphi %s2064_s26, %s2479_s26   ;;  %s1963_s25 = sphi %s2062_s25, %s2478_s25  }
   0x9   : > { %2451 = sst [smem:[#allocation18_spill]] %s1971_s27  ;;  %s1479_s30 = sadd.s32 4294967294, %s1975_s28  }
   0xa   : > { %2452 = sst [smem:[#allocation19_spill]] %s1975_s28  ;;  %s2087_s14 = sadd.s32 1, %s1975_s28  }
   0xb   : > { %2453 = sst [smem:[#allocation20_spill]] %s2087_s14  ;;  %s314_s15 = sadd.s32 1, %s1971_s27 }
   0xc   : > { %s311_s16 = ssub.s32 %s1975_s28, %s2087_s14  ;;  %p324_p0 = scmp.ne.s32.totalorder %s1971_s27, %s1967_s26 }
   0xd   : > { %p312_p1 = scmp.eq.s32.totalorder %s311_s16, 0  ;;  %p325_p2 = scmp.eq.s32.totalorder %s2083_s29, 1 }
   0xe   : > { %p330_p3 = scmp.ne.s32.totalorder %s1967_s26, %s1963_s25  ;;  %p331_p4 = scmp.eq.s32.totalorder %s1479_s30, 1 }
   0xf   : > { %s2098_s17 = scalar_select %p312_p1, %s1971_s27, %s314_s15  }
  0x10   : > { %p2100_p5 = por %p325_p2, %p324_p0  ;;  %p2104_p6 = por %p331_p4, %p330_p3 }
  0x11   : > { %2454 = sst [smem:[#allocation21_spill]] %s2098_s17  ;;  %p1480_p7 = scmp.ge.s32.totalorder %s1975_s28, 1 }
  0x12   : > { %s2455_s18 = scalar_select %p2100_p5, 1, 0 }
  0x13   : > { %s2456_s19 = scalar_select %p2104_p6, 1, 0 }
  0x14   : > { %p338_p8 = scmp.lt.s32.totalorder %s1975_s28, 3  ;;  %p2444_p9 = scmp.eq.s32.totalorder %s2083_s29, 0 }
  0x15   : > { %2457 = sst [smem:[#allocation22_spill]] %s2456_s19  ;;  %s1977_s21 = smov [#allocation7]  }
  0x16   : > { %p2111_p10 = pnand %p1480_p7, %p338_p8  ;;  %s374_s22 = sshll.u32 %s1977_s21, 4  ;;  %s375_s22 = int_to_ptr.vmem [resolvable:$true] %s374_s22 }
  0x17   : > { %s1978_s23 = smov [#allocation4]   ;;  %s1979_s15 = smov [#allocation9]  }
  0x18   : > { %s2458_s20 = scalar_select %p2111_p10, 1, 0 }
  0x19   : > { %p1676_p11 = pneg %p2111_p10  ;;  %s360_s24 = sshll.u32 %s1978_s23, 4  ;;  %s2123_s24 = int_to_ptr.vmem [resolvable:$true] %s360_s24 }
  0x1a   : > { %s385_s16 = sshll.u32 %s1979_s15, 4  ;;  %s1789_s21 = scalar_lea.hbm %s2431_s6, 16  ;;  %s2125_s16 = int_to_ptr.vmem [resolvable:$true] %s385_s16 }
  0x1b   : > { %p2119_p12 = pnand %p2444_p9, %p1676_p11  ;;  %p1790_p13 = scmp.ne.s32.totalorder %s2431_s6, %s1789_s21 }
  0x1c   : > { %p1796_p3 = scmp.lt.u32.totalorder %s1789_s21, %s2431_s6 }
  0x1d   : > { %p2135_p0 = pneg %p2119_p12 }
  0x1f   : > { %p1792_p1 = pnand %p2135_p0, %p1790_p13 }
  0x21   : > { %p1793_p2 = pneg %p1792_p1 }
  0x23   : > { %p1798_p4 = pnand %p1796_p3, %p1793_p2 }
  0x25   : > { %1801 = shalt.err (!%p1798_p4)
}
  0x26   : > { %s1802_s27 = scalar_lea.vmem %s375_s22, 16  ;;  %s1809_s14 = scalar_lea.vmem %s375_s22, 32 }
  0x27   : > { %p1803_p7 = scmp.ne.s32.totalorder %s375_s22, %s1802_s27  ;;  %p1810_p9 = scmp.lt.s32.totalorder %s375_s22, %s375_s22 }
  0x28   : > { %p1811_p6 = scmp.lt.s32.totalorder %s1809_s14, %s1802_s27 }
  0x29   : > { %p1805_p8 = pnand %p1803_p7, %p2135_p0 }
  0x2a   : > { %p1812_p5 = por %p1811_p6, %p1810_p9 }
  0x2b   : > { %p1806_p11 = pneg %p1805_p8 }
  0x2d   : > { %p1813_p10 = pnand %p1812_p5, %p1806_p11 }
  0x2f   : > { %1816 = shalt.err (!%p1813_p10)
}
  0x30   : > { %1682 = dma.hbm_to_vmem [thread:$0]  (!%p2119_p12), %s2431_s6, 16, %s375_s22, [#allocation8]  }
  0x31   : > { %s1817_s15 = scalar_lea.hbm %s2429_s4, 16 }
  0x32   : > { %p1818_p13 = scmp.ne.s32.totalorder %s2429_s4, %s1817_s15  ;;  %p1824_p5 = scmp.lt.u32.totalorder %s1817_s15, %s2429_s4 }
  0x34   : > { %p1820_p1 = pnand %p1818_p13, %p2135_p0 }
  0x36   : > { %p1821_p6 = pneg %p1820_p1 }
  0x38   : > { %p1826_p9 = pnand %p1824_p5, %p1821_p6 }
  0x3a   : > { %1829 = shalt.err (!%p1826_p9)
}
  0x3b   : > { %s1830_s22 = scalar_lea.vmem %s2123_s24, 16  ;;  %s1837_s13 = scalar_lea.vmem %s2123_s24, 32 }
  0x3c   : > { %p1831_p10 = scmp.ne.s32.totalorder %s2123_s24, %s1830_s22  ;;  %p1838_p4 = scmp.lt.s32.totalorder %s2123_s24, %s2123_s24 }
  0x3d   : > { %p1839_p7 = scmp.lt.s32.totalorder %s1837_s13, %s1830_s22 }
  0x3e   : > { %p1833_p2 = pnand %p1831_p10, %p2135_p0 }
  0x3f   : > { %p1840_p8 = por %p1839_p7, %p1838_p4 }
  0x40   : > { %p1834_p3 = pneg %p1833_p2 }
  0x42   : > { %p1841_p11 = pnand %p1840_p8, %p1834_p3 }
  0x44   : > { %1844 = shalt.err (!%p1841_p11)
}
  0x45   : > { %1679 = dma.hbm_to_vmem [thread:$0]  (!%p2119_p12), %s2429_s4, 16, %s2123_s24, [#allocation5]  }
  0x46   : > { %s1845_s21 = scalar_lea.hbm %s2432_s7, 16 }
  0x47   : > { %p1846_p13 = scmp.ne.s32.totalorder %s2432_s7, %s1845_s21  ;;  %p1852_p5 = scmp.lt.u32.totalorder %s1845_s21, %s2432_s7 }
  0x49   : > { %p1848_p1 = pnand %p1846_p13, %p2135_p0 }
  0x4b   : > { %p1849_p6 = pneg %p1848_p1 }
  0x4d   : > { %p1854_p9 = pnand %p1852_p5, %p1849_p6 }
  0x4f   : > { %1857 = shalt.err (!%p1854_p9)
}
  0x50   : > { %s1858_s24 = scalar_lea.vmem %s2125_s16, 16  ;;  %s1865_s13 = scalar_lea.vmem %s2125_s16, 32 }
  0x51   : > { %p1859_p10 = scmp.ne.s32.totalorder %s2125_s16, %s1858_s24  ;;  %p1866_p4 = scmp.lt.s32.totalorder %s2125_s16, %s2125_s16 }
  0x52   : > { %p1867_p7 = scmp.lt.s32.totalorder %s1865_s13, %s1858_s24 }
  0x53   : > { %p1861_p2 = pnand %p1859_p10, %p2135_p0 }
  0x54   : > { %p1868_p8 = por %p1867_p7, %p1866_p4 }
  0x55   : > { %p1862_p3 = pneg %p1861_p2 }
  0x57   : > { %p1869_p11 = pnand %p1868_p8, %p1862_p3 }
  0x59   : > { %1872 = shalt.err (!%p1869_p11)
}
  0x5a   : > { %1685 = dma.hbm_to_vmem [thread:$0]  (!%p2119_p12), %s2432_s7, 16, %s2125_s16, [#allocation8]  }
  0x5b   : > { %s1980_s19 = smov [#allocation10]   ;;  %s1873_s27 = scalar_lea.hbm %s2433_s8, 16 }
  0x5c   : > { %s396_s25 = sshll.u32 %s1980_s19, 4  ;;  %p1874_p13 = scmp.ne.s32.totalorder %s2433_s8, %s1873_s27  ;;  %s397_s25 = int_to_ptr.vmem [resolvable:$true] %s396_s25 }
  0x5d   : > { %p1880_p5 = scmp.lt.u32.totalorder %s1873_s27, %s2433_s8 }
  0x5e   : > { %p1876_p1 = pnand %p1874_p13, %p2135_p0 }
  0x60   : > { %p1877_p6 = pneg %p1876_p1 }
  0x62   : > { %p1882_p9 = pnand %p1880_p5, %p1877_p6 }
  0x64   : > { %1885 = shalt.err (!%p1882_p9)
}
  0x65   : > { %s1886_s16 = scalar_lea.vmem %s397_s25, 16  ;;  %s1893_s28 = scalar_lea.vmem %s397_s25, 32 }
  0x66   : > { %p1887_p10 = scmp.ne.s32.totalorder %s397_s25, %s1886_s16  ;;  %p1894_p4 = scmp.lt.s32.totalorder %s397_s25, %s397_s25 }
  0x67   : > { %p1895_p7 = scmp.lt.s32.totalorder %s1893_s28, %s1886_s16 }
  0x68   : > { %p1889_p2 = pnand %p1887_p10, %p2135_p0 }
  0x69   : > { %p1896_p8 = por %p1895_p7, %p1894_p4 }
  0x6a   : > { %p1890_p3 = pneg %p1889_p2 }
  0x6c   : > { %p1897_p11 = pnand %p1896_p8, %p1890_p3 }
  0x6e   : > { %1900 = shalt.err (!%p1897_p11)
}
  0x6f   : > { %1688 = dma.hbm_to_vmem [thread:$0]  (!%p2119_p12), %s2433_s8, 16, %s397_s25, [#allocation11]  }
  0x70   : > { %p2461_p13 = scmp.ne.s32.totalorder %s2458_s20, 0 }
  0x71   : > { %p2462_p1 = scmp.eq.s32.totalorder (!%p2461_p13), %s2083_s29, 0 }
  0x72   : > { %428 = sbr.rel (%p2461_p13) target bundleno = 2798 (0xaee), region = 72 }
  0x79   : > { %1946 = dma.done.wait (%p2462_p1), [#allocation5], 16   ;;  %p2463_p0 = pmov %p2462_p1 }
  0x7b   : > { %1948 = vsyncadd (%p2463_p0), [#allocation5], 4294967280  ;;  %p2464_p6 = pmov %p2463_p0 }
  0x7c   : > { %p2465_p5 = pmov %p2463_p0 }
  0x7d   : > { %1950 = dma.done.wait (%p2464_p6), [#allocation8], 32  }
  0x7e   : > { %1952 = vsyncadd (%p2465_p5), [#allocation8], 4294967264  ;;  %p2466_p9 = pmov %p2463_p0 }
  0x7f   : > { %p2467_p12 = pmov %p2463_p0 }
  0x80   : > { %1954 = dma.done.wait (%p2466_p9), [#allocation11], 16  }
  0x81   : > { %1956 = vsyncadd (%p2467_p12), [#allocation11], 4294967280  ;;  %p483_p10 = scmp.lt.s32.totalorder %s2083_s29, 1  ;;  %vm491_vm0 = vcmask 261120   ;;  %v1748_v7 = vld [vmem:[%s2428_s3] sm:$0xff]   ;;  %v1981_v8 = vmov 0.0  }
  0x82   : > { %1574 = vmatprep.subr.bf16.mxu0 %v1981_v8  ;;  %vm1982_vm1 = vmmov 0   ;;  %v1749_v9 = vld [vmem:[%s2428_s3 + $0x8] sm:$0xff]   ;;  %1582 = vmatprep.subr.bf16.mxu1 %v1981_v8  ;;  %v1493_v14 = vld [vmem:[%s2426_s1] ss:$0 sm:$0xff]  ;;  %v1495_v20 = vld [vmem:[#allocation4] ss:$0 sm:$0xff] }
  0x83   : > { %s484_s20 = scalar_select %p483_p10, %s2083_s29, 1  ;;  %1578 = vmatprep.mubr.msk.bf16.mxu0 %vm1982_vm1, %v1981_v8  ;;  %1575 = vmatpush3.bf16.msra.mxu0 %v1748_v7  ;;  %v1494_v16 = vld [vmem:[%s2427_s2] ss:$0 sm:$0xff]  ;;  %vm589_vm2 = vcmask 257024   ;;  %vm608_vm3 = vcmask 64512   ;;  %vm670_vm4 = vcmask 1043456  }
  0x84   : > { %1576 = vmatprep.subr.bf16.mxu0 %v1981_v8  ;;  %1584 = vmatprep.mubr.msk.bf16.mxu1 %vm1982_vm1, %v1981_v8  ;;  %s1983_s17 = smov 96   ;;  %s1984_s19 = smov 120   ;;  %vm715_vm5 = vcmask 60416   ;;  %vm846_vm6 = vcmask 126016   ;;  %vm977_vm7 = vcmask 191616   ;;  %vm1108_vm8 = vcmask 257216  }
  0x85   : > { %s1492_s30 = sshll.u32 %s484_s20, 3  ;;  %s1985_s20 = smov 112   ;;  %vm1319_vm9 = vcmask 523264  }
  0x86   : > { %s486_s21 = scalar_lea.vmem %s2425_s0, %s1492_s30  ;;  %s1986_s30 = smov 104  }
  0x87   : > { %v2236_v0 = vld [vmem:[%s486_s21] sm:$0xff]  ;;  %1577 = vmatpush3.bf16.msra.mxu0 %v1749_v9  ;;  %s1987_s23 = smov 64   ;;  %s1988_s25 = smov 8  }
  0x88   : > { %v492_v1 = vsel %vm491_vm0, %v2236_v0, 0.0  ;;  %1588 = vmatprep.subr.bf16.mxu0 %v1981_v8  ;;  %s1989_s22 = smov 16   ;;  %s1990_s24 = smov 24  }
  0x89   : > { %493 = vadd.xlane.f32.xlu0 %v492_v1  ;;  %p2470_p3 = scmp.ne.s32.totalorder %s2455_s18, 0  ;;  %s1991_s14 = smov [#allocation12]  }
 0x116   : > { %v494_v2 = vpop.xlane.xlu0 %493 }
 0x117   : > { %v496_v3 = vmul.f32 0.03125, %v494_v2 }
 0x119   : > { %v497_v4 = vsub.f32 %v2236_v0, %v496_v3 }
 0x11b   : > { %v498_v5 = vmul.f32 %v497_v4, %v497_v4 }
 0x11d   : > { %v499_v6 = vsel %vm491_vm0, %v498_v5, 0.0 }
 0x11e   : > { %500 = vadd.xlane.f32.xlu0 %v499_v6 }
 0x1ab   : > { %v501_v10 = vpop.xlane.xlu0 %500 }
 0x1ac   : > { %v502_v11 = vmul.f32 0.03125, %v501_v10 }
 0x1ae   : > { %v503_v12 = vadd.f32 1e-05, %v502_v11 }
 0x1b0   : > { %1767 = vrsqrt.f32 %v503_v12 }
 0x1ba   : > { %v1768_v13 = vpop.eup %1767 }
 0x1bb   : > { %v505_v15 = vmul.f32 %v1768_v13, %v497_v4 }
 0x1bd   : > { %v512_v17 = vmul.f32 %v1493_v14, %v505_v15 }
 0x1bf   : > { %v519_v18 = vadd.f32 %v1494_v16, %v512_v17 }
 0x1c1   : > { %v520_v19 = vpack.c.bf16 %v519_v18, %v519_v18 }
 0x1c3   : > { %1579 = vmatmul.mubr.msk.bf16.vlgmr.msra.gmra.mrb[0].mxu0 %vm491_vm0, %v520_v19 }
 0x1c4   : > { %1590 = vmatprep.mubr.msk.bf16.mxu0 %vm1982_vm1, %v1981_v8 }
 0x296   : > { %v581_v21 = vpop.f32.mrb[0].mxu0 }
 0x297   : > { %v582_v22 = vadd.f32 %v1495_v20, %v581_v21  ;;  %v1580_v23 = vpop.f32.mrb[1].mxu0 }
 0x298   : > { %v584_v24 = vpop.f32.mrb[2].mxu0 }
 0x299   : > { %v587_v25 = vmul.f32 0.35355338, %v582_v22  ;;  %v1581_v26 = vpop.f32.mrb[3].mxu0  ;;  %v2265_v27 = vpack.c.bf16 %v582_v22, %v582_v22 }
 0x29b   : > { %v588_v28 = vpack.c.bf16 %v587_v25, %v587_v25  ;;  %595 = vrot.lane.b32.xlu1 %v2265_v27, %s1983_s17  ;;  %s1537_s17 = sshll.u32 %s2083_s29, 7 }
 0x29d   : > { %590 = vst.msk [vmem:[#allocation2] sm:$0xf] %vm589_vm2, %v588_v28 }
 0x2a4   : > { %v1750_v29 = vld [vmem:[#allocation2] ss:$0 sps:$4 sm:$0xff]  }
 0x2a5   : > { %723 = vrot.lane.b32.xlu0 %v1750_v29, %s1984_s19  ;;  %v605_v35 = vld [vmem:[#allocation2] sm:$0xf] }
 0x2a6   : > { %v1753_v36 = vld [vmem:[#allocation2] ss:$0 sps:$4 sm:$0xff]  }
 0x2a7   : > { %v1755_v38 = vld [vmem:[#allocation2] ss:$0 sps:$4 sm:$0xff]  }
 0x30d   : > { %v596_v30 = vpop.permute.xlu1 %595 }
 0x30e   : > { %599 = vst.msk [vmem:[#allocation2 + $0x4] sm:$0xf] %vm589_vm2, %v596_v30 }
 0x315   : > { %v606_v31 = vld [vmem:[#allocation2 + $0x4] sm:$0xf] }
 0x316   : > { %v1751_v32 = vld [vmem:[#allocation2 + $0x4] ss:$0 sps:$4 sm:$0xff]   ;;  %v613_v33 = vsel %vm608_vm3, %v606_v31, 0 }
 0x317   : > { %1583 = vmatpush3.bf16.xpose.msra.mxu1 %v613_v33  ;;  %728 = vrot.lane.b32.xlu1 %v1751_v32, %s1984_s19  ;;  %v1752_v34 = vld [vmem:[#allocation2 + $0x4] ss:$0 sps:$4 sm:$0xff]   ;;  %v724_v42 = vpop.permute.xlu0 %723 }
 0x318   : > { %1594 = vmatprep.subr.bf16.mxu1 %v1981_v8  ;;  %v1754_v37 = vld [vmem:[#allocation2 + $0x4] ss:$0 sps:$4 sm:$0xff]  }
 0x31b   : > { %859 = vrot.lane.b32.xlu1 %v1752_v34, %s1985_s20 }
 0x31e   : > { %1585 = vmatmul.mubr.msk.bf16.vlgmr.msra.gmra.mrb[0].mxu1 %vm608_vm3, %v605_v35 }
 0x31f   : > { %854 = vrot.lane.b32.xlu1 %v1753_v36, %s1985_s20  ;;  %1596 = vmatprep.mubr.msk.bf16.mxu1 %vm1982_vm1, %v1981_v8 }
 0x323   : > { %990 = vrot.lane.b32.xlu1 %v1754_v37, %s1986_s30 }
 0x327   : > { %985 = vrot.lane.b32.xlu1 %v1755_v38, %s1986_s30 }
 0x389   : > { %v729_v39 = vpop.permute.xlu1 %728 }
 0x38a   : > { %v734_v40 = vsel %vm608_vm3, %v729_v39, 0 }
 0x38b   : > { %1595 = vmatpush3.bf16.xpose.msra.mxu1 %v734_v40 }
 0x38c   : > { %1606 = vmatprep.subr.bf16.mxu1 %v1981_v8 }
 0x38d   : > { %v860_v41 = vpop.permute.xlu1 %859 }
 0x38e   : > { %v865_v44 = vsel %vm608_vm3, %v860_v41, 0 }
 0x391   : > { %v855_v43 = vpop.permute.xlu1 %854 }
 0x392   : > { %1597 = vmatmul.mubr.msk.bf16.vlgmr.msra.gmra.mrb[4].mxu1 %vm608_vm3, %v724_v42 }
 0x393   : > { %1607 = vmatpush3.bf16.xpose.msra.mxu1 %v865_v44  ;;  %1608 = vmatprep.mubr.msk.bf16.mxu1 %vm1982_vm1, %v1981_v8 }
 0x394   : > { %1618 = vmatprep.subr.bf16.mxu1 %v1981_v8 }
 0x395   : > { %v991_v45 = vpop.permute.xlu1 %990 }
 0x396   : > { %v996_v46 = vsel %vm608_vm3, %v991_v45, 0 }
 0x399   : > { %v986_v47 = vpop.permute.xlu1 %985 }
 0x39a   : > { %1609 = vmatmul.mubr.msk.bf16.vlgmr.msra.gmra.mrb[8].mxu1 %vm608_vm3, %v855_v43 }
 0x39b   : > { %1619 = vmatpush3.bf16.xpose.msra.mxu1 %v996_v46  ;;  %1620 = vmatprep.mubr.msk.bf16.mxu1 %vm1982_vm1, %v1981_v8 }
 0x39c   : > { %1630 = vmatprep.subr.bf16.mxu1 %v1981_v8 }
 0x3a2   : > { %1621 = vmatmul.mubr.msk.bf16.vlgmr.msra.gmra.mrb[12].mxu1 %vm608_vm3, %v986_v47 }
 0x3a3   : > { %1634 = vmatprep.mubr.msk.bf16.mxu1 %vm1982_vm1, %v1981_v8 }
 0x3f1   : > { %v649_v48 = vpop.f32.mrb[0].mxu1 }
 0x3f2   : > { %v1586_v49 = vpop.f32.mrb[1].mxu1  ;;  %v655_v50 = vsel %vm608_vm3, %v649_v48, -inf }
 0x3f3   : > { %656 = vmax.xlane.f32.xlu1 %v655_v50  ;;  %v652_v51 = vpop.f32.mrb[2].mxu1 }
 0x3f4   : > { %v1587_v52 = vpop.f32.mrb[3].mxu1 }
 0x465   : > { %v770_v53 = vpop.f32.mrb[4].mxu1 }
 0x466   : > { %v1598_v54 = vpop.f32.mrb[5].mxu1  ;;  %v776_v55 = vsel %vm608_vm3, %v770_v53, -inf }
 0x467   : > { %777 = vmax.xlane.f32.xlu0 %v776_v55  ;;  %v773_v56 = vpop.f32.mrb[6].mxu1 }
 0x468   : > { %v1599_v57 = vpop.f32.mrb[7].mxu1 }
 0x46d   : > { %v901_v58 = vpop.f32.mrb[8].mxu1 }
 0x46e   : > { %v1610_v59 = vpop.f32.mrb[9].mxu1  ;;  %v907_v60 = vsel %vm608_vm3, %v901_v58, -inf }
 0x46f   : > { %908 = vmax.xlane.f32.xlu1 %v907_v60  ;;  %v904_v61 = vpop.f32.mrb[10].mxu1 }
 0x470   : > { %v1611_v62 = vpop.f32.mrb[11].mxu1 }
 0x475   : > { %v1032_v63 = vpop.f32.mrb[12].mxu1 }
 0x476   : > { %v1622_v1 = vpop.f32.mrb[13].mxu1  ;;  %v1038_v2 = vsel %vm608_vm3, %v1032_v63, -inf }
 0x477   : > { %1039 = vmax.xlane.f32.xlu0 %v1038_v2  ;;  %v1035_v3 = vpop.f32.mrb[14].mxu1  ;;  %v1759_v1 = vld [vmem:[%s2430_s5] sm:$0xff]  }
 0x478   : > { %v1623_v4 = vpop.f32.mrb[15].mxu1  ;;  %1631 = vmatpush3.bf16.msra.mxu1 %v1759_v1  ;;  %v1760_v3 = vld [vmem:[%s2430_s5 + $0x8] sm:$0xff]  }
 0x479   : > { %1632 = vmatprep.subr.bf16.mxu1 %v1981_v8 }
 0x47c   : > { %1633 = vmatpush3.bf16.msra.mxu1 %v1760_v3 }
 0x47d   : > { %1646 = vmatprep.subr.bf16.mxu1 %v1981_v8 }
 0x480   : > { %v657_v5 = vpop.xlane.xlu1 %656  ;;  %600 = vrot.lane.b32.xlu1 %v2265_v27, %s1987_s23 }
 0x481   : > { %v658_v6 = vsub.f32 %v649_v48, %v657_v5 }
 0x483   : > { %v659_v7 = vmul.f32 1.442695, %v658_v6 }
 0x485   : > { %1769 = vpow2.f32 %v659_v7 }
 0x48f   : > { %v1770_v9 = vpop.eup %1769 }
 0x490   : > { %v661_v10 = vsel %vm608_vm3, %v1770_v9, 0.0 }
 0x491   : > { %662 = vadd.xlane.f32.xlu0 %v661_v10 }
 0x4f4   : > { %v778_v11 = vpop.xlane.xlu0 %777 }
 0x4f5   : > { %v779_v12 = vsub.f32 %v770_v53, %v778_v11 }
 0x4f7   : > { %v780_v13 = vmul.f32 1.442695, %v779_v12 }
 0x4f9   : > { %1771 = vpow2.f32 %v780_v13 }
 0x4fc   : > { %v909_v14 = vpop.xlane.xlu1 %908 }
 0x4fd   : > { %v910_v15 = vsub.f32 %v901_v58, %v909_v14 }
 0x4ff   : > { %v911_v16 = vmul.f32 1.442695, %v910_v15 }
 0x500   : > { %v601_v17 = vpop.permute.xlu1 %600 }
 0x501   : > { %1773 = vpow2.f32 %v911_v16  ;;  %604 = vst.msk [vmem:[#allocation2 + $0x8] sm:$0xf] %vm589_vm2, %v601_v17 }
 0x503   : > { %v1772_v18 = vpop.eup %1771 }
 0x504   : > { %v1040_v19 = vpop.xlane.xlu0 %1039  ;;  %v782_v20 = vsel %vm608_vm3, %v1772_v18, 0.0 }
 0x505   : > { %v1041_v21 = vsub.f32 %v1032_v63, %v1040_v19  ;;  %783 = vadd.xlane.f32.xlu0 %v782_v20 }
 0x507   : > { %v1042_v22 = vmul.f32 1.442695, %v1041_v21 }
 0x508   : > { %v607_v23 = vld [vmem:[#allocation2 + $0x8] sm:$0xf] }
 0x509   : > { %v1756_v24 = vld [vmem:[#allocation2 + $0x8] ss:$0 sps:$4 sm:$0xff]   ;;  %1775 = vpow2.f32 %v1042_v22  ;;  %v672_v25 = vsel %vm670_vm4, %v607_v23, 0 }
 0x50a   : > { %1589 = vmatpush3.bf16.msra.mxu0 %v672_v25  ;;  %922 = vrot.lane.b32.xlu1 %v1756_v24, %s1985_s20  ;;  %v1757_v28 = vld [vmem:[#allocation2 + $0x8] ss:$0 sps:$4 sm:$0xff]  }
 0x50b   : > { %v1774_v26 = vpop.eup %1773  ;;  %1600 = vmatprep.subr.bf16.mxu0 %v1981_v8  ;;  %v1758_v33 = vld [vmem:[#allocation2 + $0x8] ss:$0 sps:$4 sm:$0xff]  }
 0x50c   : > { %v913_v27 = vsel %vm608_vm3, %v1774_v26, 0.0 }
 0x50d   : > { %914 = vadd.xlane.f32.xlu0 %v913_v27 }
 0x50e   : > { %1053 = vrot.lane.b32.xlu1 %v1757_v28, %s1986_s30 }
 0x513   : > { %v1776_v29 = vpop.eup %1775 }
 0x514   : > { %v1044_v30 = vsel %vm608_vm3, %v1776_v29, 0.0 }
 0x515   : > { %1045 = vadd.xlane.f32.xlu0 %v1044_v30 }
 0x51e   : > { %v663_v31 = vpop.xlane.xlu0 %662 }
 0x51f   : > { %1777 = vrcp.f32 %v663_v31  ;;  %v1761_v31 = vld [vmem:[%s2434_s9] sm:$0xff]  }
 0x529   : > { %v1778_v32 = vpop.eup %1777 }
 0x52a   : > { %v665_v34 = vmul.f32 %v1778_v32, %v1770_v9 }
 0x52b   : > { %791 = vrot.lane.b32.xlu0 %v1758_v33, %s1984_s19 }
 0x52c   : > { %v666_v35 = vpack.c.bf16 %v665_v34, %v665_v34 }
 0x52e   : > { %1591 = vmatmul.mubr.msk.bf16.vlgmr.msra.gmra.mrb[4].mxu0 %vm608_vm3, %v666_v35 }
 0x52f   : > { %1602 = vmatprep.mubr.msk.bf16.mxu0 %vm1982_vm1, %v1981_v8 }
 0x57c   : > { %v923_v43 = vpop.permute.xlu1 %922 }
 0x57d   : > { %v928_v46 = vsel %vm670_vm4, %v923_v43, 0  ;;  %v1764_v43 = vld [vmem:[%s2436_s11 + $0x8] sm:$0xff]  }
 0x580   : > { %v1054_v48 = vpop.permute.xlu1 %1053 }
 0x581   : > { %v1059_v51 = vsel %vm670_vm4, %v1054_v48, 0 }
 0x592   : > { %v784_v36 = vpop.xlane.xlu0 %783 }
 0x593   : > { %1779 = vrcp.f32 %v784_v36  ;;  %v1524_v36 = vld [vmem:[#allocation9] ss:$0 sm:$0xff] }
 0x59a   : > { %v915_v37 = vpop.xlane.xlu0 %914 }
 0x59b   : > { %1781 = vrcp.f32 %v915_v37 }
 0x59d   : > { %v1780_v38 = vpop.eup %1779 }
 0x59e   : > { %v786_v40 = vmul.f32 %v1780_v38, %v1772_v18  ;;  %v1520_v18 = vld [vmem:[#allocation7] ss:$0 sm:$0xff]  ;;  %v1525_v38 = vld [vmem:[#allocation10] ss:$0 sm:$0xff] }
 0x5a0   : > { %v787_v44 = vpack.c.bf16 %v786_v40, %v786_v40 }
 0x5a2   : > { %v1046_v39 = vpop.xlane.xlu0 %1045 }
 0x5a3   : > { %1783 = vrcp.f32 %v1046_v39 }
 0x5a5   : > { %v1782_v45 = vpop.eup %1781 }
 0x5a6   : > { %v792_v41 = vpop.permute.xlu0 %791  ;;  %v917_v47 = vmul.f32 %v1782_v45, %v1774_v26  ;;  %v1766_v45 = vld [vmem:[%s2436_s11 + $0x18] sm:$0xff]  }
 0x5a7   : > { %v797_v42 = vsel %vm670_vm4, %v792_v41, 0 }
 0x5a8   : > { %1601 = vmatpush3.bf16.msra.mxu0 %v797_v42  ;;  %v918_v49 = vpack.c.bf16 %v917_v47, %v917_v47  ;;  %v1763_v42 = vld [vmem:[%s2436_s11] sm:$0xff]  }
 0x5a9   : > { %1612 = vmatprep.subr.bf16.mxu0 %v1981_v8 }
 0x5ab   : > { %1603 = vmatmul.mubr.msk.bf16.vlgmr.msra.gmra.mrb[8].mxu0 %vm608_vm3, %v787_v44  ;;  %v1765_v44 = vld [vmem:[%s2436_s11 + $0x10] sm:$0xff]  }
 0x5ac   : > { %1613 = vmatpush3.bf16.msra.mxu0 %v928_v46  ;;  %1614 = vmatprep.mubr.msk.bf16.mxu0 %vm1982_vm1, %v1981_v8  ;;  %v1526_v46 = vld [vmem:[%s2435_s10] ss:$0 sm:$0xff] }
 0x5ad   : > { %1624 = vmatprep.subr.bf16.mxu0 %v1981_v8  ;;  %v1784_v50 = vpop.eup %1783 }
 0x5ae   : > { %v1048_v52 = vmul.f32 %v1784_v50, %v1776_v29 }
 0x5b0   : > { %v1049_v53 = vpack.c.bf16 %v1048_v52, %v1048_v52 }
 0x5b3   : > { %1615 = vmatmul.mubr.msk.bf16.vlgmr.msra.gmra.mrb[12].mxu0 %vm608_vm3, %v918_v49 }
 0x5b4   : > { %1625 = vmatpush3.bf16.msra.mxu0 %v1059_v51  ;;  %1626 = vmatprep.mubr.msk.bf16.mxu0 %vm1982_vm1, %v1981_v8 }
 0x5b5   : > { %1638 = vmatprep.subr.bf16.mxu0 %v1981_v8 }
 0x5bb   : > { %1627 = vmatmul.mubr.msk.bf16.vlgmr.msra.gmra.mrb[16].mxu0 %vm608_vm3, %v1049_v53 }
 0x5bc   : > { %1642 = vmatprep.mubr.msk.bf16.mxu0 %vm1982_vm1, %v1981_v8  ;;  %1639 = vmatpush3.bf16.msra.mxu0 %v1761_v31 }
 0x5bd   : > { %1640 = vmatprep.subr.bf16.mxu0 %v1981_v8 }
 0x601   : > { %v708_v54 = vpop.f32.mrb[4].mxu0 }
 0x602   : > { %v714_v55 = vpack.c.bf16 %v708_v54, %v708_v54  ;;  %v1592_v56 = vpop.f32.mrb[5].mxu0 }
 0x603   : > { %v711_v57 = vpop.f32.mrb[6].mxu0 }
 0x604   : > { %716 = vst.msk [vmem:[#allocation3] sm:$0xf] %vm715_vm5, %v714_v55  ;;  %v1593_v58 = vpop.f32.mrb[7].mxu0  ;;  %v1530_v57 = vld [vmem:[%s2437_s12] ss:$0 sm:$0xff] }
 0x67e   : > { %v833_v59 = vpop.f32.mrb[8].mxu0 }
 0x67f   : > { %v1541_v60 = vpack.c.bf16 %v833_v59, %v833_v59  ;;  %v1604_v61 = vpop.f32.mrb[9].mxu0 }
 0x680   : > { %v836_v62 = vpop.f32.mrb[10].mxu0 }
 0x681   : > { %843 = vrot.lane.b32.xlu1 %v1541_v60, %s1988_s25  ;;  %v1605_v63 = vpop.f32.mrb[11].mxu0  ;;  %s2468_s25 = sld [smem:[#allocation23_spill]] }
 0x686   : > { %v964_v2 = vpop.f32.mrb[12].mxu0 }
 0x687   : > { %v1542_v4 = vpack.c.bf16 %v964_v2, %v964_v2  ;;  %v1616_v5 = vpop.f32.mrb[13].mxu0  ;;  %s2469_s21 = smov %s2468_s25  ;;  %s2382_s15 = scalar_lea.hbm %s2468_s25, %s1537_s17 }
 0x688   : > { %v967_v6 = vpop.f32.mrb[14].mxu0 }
 0x689   : > { %974 = vrot.lane.b32.xlu1 %v1542_v4, %s1989_s22  ;;  %v1617_v7 = vpop.f32.mrb[15].mxu0  ;;  %s1905_s22 = sshll.u32 %s1991_s14, 4  ;;  %s1906_s22 = int_to_ptr.vmem [resolvable:$false] %s1905_s22 }
 0x68e   : > { %v1095_v9 = vpop.f32.mrb[16].mxu0 }
 0x68f   : > { %v1543_v10 = vpack.c.bf16 %v1095_v9, %v1095_v9  ;;  %v1628_v11 = vpop.f32.mrb[17].mxu0 }
 0x690   : > { %v1098_v12 = vpop.f32.mrb[18].mxu0 }
 0x691   : > { %1105 = vrot.lane.b32.xlu1 %v1543_v10, %s1990_s24  ;;  %v1629_v13 = vpop.f32.mrb[19].mxu0  ;;  %s480_s24 = sand.u32 1, %s1967_s26  }
 0x692   : > { %s1491_s13 = sshll.u32 %s480_s24, 3  ;;  %s1366_s29 = scalar_lea.sflag [#allocation6], %s480_s24 }
 0x693   : > { %s482_s19 = scalar_lea.vmem [#allocation12], %s1491_s13  ;;  %s1907_s13 = scalar_lea.vmem %s1906_s22, 256 }
 0x694   : > { %s1379_s20 = sshll.u32 %s482_s19, 4  ;;  %s2384_s20 = int_to_ptr.vmem [resolvable:$true] %s1379_s20 }
 0x695   : > { %s1901_s27 = scalar_lea.vmem %s2384_s20, 128  ;;  %p1908_p8 = scmp.lt.s32.totalorder %s2384_s20, %s1906_s22 }
 0x696   : > { %p1902_p2 = scmp.ne.s32.totalorder %s2384_s20, %s1901_s27  ;;  %p1909_p11 = scmp.lt.s32.totalorder %s1907_s13, %s1901_s27 }
 0x698   : > { %p1903_p4 = pnand %p1902_p2, %p2470_p3  ;;  %p1910_p13 = por %p1909_p11, %p1908_p8 }
 0x69a   : > { %p1904_p7 = pneg %p1903_p4 }
 0x69c   : > { %p1911_p1 = pnand %p1910_p13, %p1904_p7 }
 0x6f3   : > { %v844_v14 = vpop.permute.xlu1 %843 }
 0x6f4   : > { %847 = vst.msk [vmem:[#allocation3] sm:$0xf] %vm846_vm6, %v844_v14 }
 0x6fb   : > { %v975_v15 = vpop.permute.xlu1 %974 }
 0x6fc   : > { %978 = vst.msk [vmem:[#allocation3] sm:$0xf] %vm977_vm7, %v975_v15 }
 0x703   : > { %v1106_v16 = vpop.permute.xlu1 %1105 }
 0x704   : > { %1109 = vst.msk [vmem:[#allocation3] sm:$0xf] %vm1108_vm8, %v1106_v16 }
 0x70b   : > { %v1110_v17 = vld [vmem:[#allocation3] sm:$0xf] }
 0x70c   : > { %1635 = vmatmul.mubr.msk.bf16.vlgmr.msra.gmra.mrb[16].mxu1 %vm491_vm0, %v1110_v17 }
 0x70d   : > { %1654 = vmatprep.mubr.msk.bf16.mxu1 %vm1982_vm1, %v1981_v8  ;;  %1647 = vmatpush3.bf16.msra.mxu1 %v1763_v42 }
 0x70e   : > { %1648 = vmatprep.subr.bf16.mxu1 %v1981_v8 }
 0x711   : > { %1649 = vmatpush3.bf16.msra.mxu1 %v1764_v43 }
 0x712   : > { %1650 = vmatprep.subr.bf16.mxu1 %v1981_v8 }
 0x715   : > { %1651 = vmatpush3.bf16.msra.mxu1 %v1765_v44 }
 0x716   : > { %1652 = vmatprep.subr.bf16.mxu1 %v1981_v8 }
 0x719   : > { %1653 = vmatpush3.bf16.msra.mxu1 %v1766_v45 }
 0x7df   : > { %v1171_v19 = vpop.f32.mrb[16].mxu1 }
 0x7e0   : > { %v1172_v20 = vadd.f32 %v1520_v18, %v1171_v19  ;;  %v1636_v21 = vpop.f32.mrb[17].mxu1 }
 0x7e1   : > { %v1174_v22 = vpop.f32.mrb[18].mxu1 }
 0x7e2   : > { %v2341_v23 = vadd.f32 %v1172_v20, %v2236_v0  ;;  %v1637_v24 = vpop.f32.mrb[19].mxu1  ;;  %v1762_v0 = vld [vmem:[%s2434_s9 + $0x8] sm:$0xff]  }
 0x7e3   : > { %1641 = vmatpush3.bf16.msra.mxu0 %v1762_v0 }
 0x7e4   : > { %v1180_v25 = vsel %vm491_vm0, %v2341_v23, 0.0 }
 0x7e5   : > { %1181 = vadd.xlane.f32.xlu1 %v1180_v25 }
 0x872   : > { %v1182_v26 = vpop.xlane.xlu1 %1181 }
 0x873   : > { %v1183_v27 = vmul.f32 0.03125, %v1182_v26 }
 0x875   : > { %v1184_v28 = vsub.f32 %v2341_v23, %v1183_v27 }
 0x877   : > { %v1185_v29 = vmul.f32 %v1184_v28, %v1184_v28 }
 0x879   : > { %v1186_v30 = vsel %vm491_vm0, %v1185_v29, 0.0 }
 0x87a   : > { %1187 = vadd.xlane.f32.xlu0 %v1186_v30 }
 0x907   : > { %v1188_v32 = vpop.xlane.xlu0 %1187 }
 0x908   : > { %v1189_v33 = vmul.f32 0.03125, %v1188_v32 }
 0x90a   : > { %v1190_v34 = vadd.f32 1e-05, %v1189_v33 }
 0x90c   : > { %1785 = vrsqrt.f32 %v1190_v34 }
 0x916   : > { %v1786_v35 = vpop.eup %1785 }
 0x917   : > { %v1192_v37 = vmul.f32 %v1786_v35, %v1184_v28 }
 0x919   : > { %v1199_v39 = vmul.f32 %v1524_v36, %v1192_v37 }
 0x91b   : > { %v1206_v40 = vadd.f32 %v1525_v38, %v1199_v39 }
 0x91d   : > { %v1207_v41 = vpack.c.bf16 %v1206_v40, %v1206_v40 }
 0x91f   : > { %1643 = vmatmul.mubr.msk.bf16.vlgmr.msra.gmra.mrb[20].mxu0 %vm491_vm0, %v1207_v41 }
 0x9f2   : > { %v1268_v47 = vpop.f32.mrb[20].mxu0 }
 0x9f3   : > { %v1269_v48 = vadd.f32 %v1526_v46, %v1268_v47  ;;  %v1644_v49 = vpop.f32.mrb[21].mxu0 }
 0x9f4   : > { %v1271_v50 = vpop.f32.mrb[22].mxu0 }
 0x9f5   : > { %v1275_v51 = vmul.f32 0.70710677, %v1269_v48  ;;  %v1645_v52 = vpop.f32.mrb[23].mxu0  ;;  %v1274_v8 = vmul.f32 0.5, %v1269_v48 }
 0x9f7   : > { %1787 = verf.f32 %v1275_v51 }
 0xa01   : > { %v1788_v53 = vpop.eup %1787 }
 0xa02   : > { %v1277_v54 = vadd.f32 1.0, %v1788_v53 }
 0xa04   : > { %v1278_v55 = vmul.f32 %v1277_v54, %v1274_v8 }
 0xa06   : > { %v1279_v56 = vpack.c.bf16 %v1278_v55, %v1278_v55 }
 0xa08   : > { %1655 = vmatmul.mubr.msk.bf16.vlgmr.msra.gmra.mrb[20].mxu1 %vm1319_vm9, %v1279_v56 }
 0xadb   : > { %v1357_v58 = vpop.f32.mrb[20].mxu1 }
 0xadc   : > { %v1358_v59 = vadd.f32 %v1530_v57, %v1357_v58  ;;  %v1656_v60 = vpop.f32.mrb[21].mxu1 }
 0xadd   : > { %v1360_v61 = vpop.f32.mrb[22].mxu1 }
 0xade   : > { %v1363_v62 = vadd.f32 %v1358_v59, %v2341_v23  ;;  %v1657_v63 = vpop.f32.mrb[23].mxu1 }
 0xae0   : > { %1364 = vst.msk [vmem:[%s482_s19] sm:$0xff] %vm491_vm0, %v1363_v62 }
 0xae1   : > { %1914 = shalt.err (!%p1911_p1)
}
 0xae2   : > { %s1915_s24 = scalar_lea.hbm %s2382_s15, 128  ;;  %s1919_s17 = scalar_lea.hbm %s2469_s21, 256 }
 0xae3   : > { %p1916_p0 = scmp.ne.s32.totalorder %s2382_s15, %s1915_s24  ;;  %p1920_p9 = scmp.lt.u32.totalorder %s2382_s15, %s2469_s21 }
 0xae4   : > { %p1921_p12 = scmp.lt.u32.totalorder %s1919_s17, %s1915_s24  ;;  %p1923_p2 = scmp.lt.u32.totalorder %s1915_s24, %s2382_s15 }
 0xae5   : > { %p1917_p6 = pnand %p1916_p0, %p2470_p3 }
 0xae6   : > { %p1922_p10 = por %p1921_p12, %p1920_p9 }
 0xae7   : > { %p1918_p5 = pneg %p1917_p6 }
 0xae8   : > { %p1924_p4 = por %p1923_p2, %p1922_p10 }
 0xaea   : > { %p1925_p7 = pnand %p1924_p4, %p1918_p5 }
 0xaec   : > { %1928 = shalt.err (!%p1925_p7)
}
 0xaed   : > { %1674 = dma.vmem_to_hbm [thread:$0]  (%p2470_p3), %s2384_s20, 128, %s2382_s15, %s1366_s29  }
 0xaee PF: > { %s2471_s23 = sld [smem:[#allocation19_spill]]  ;;  %s2472_s25 = sld [smem:[#allocation17_spill]] }
 0xaef   : > { %s2473_s27 = sld [smem:[#allocation22_spill]] }
 0xaf4   : > { %p1701_p8 = scmp.ge.s32.totalorder %s2471_s23, 2  ;;  %s1391_s14 = sand.u32 1, %s2472_s25  }
 0xaf5   : > { %p2474_p11 = scmp.ne.s32.totalorder %s2473_s27, 0  ;;  %s1392_s22 = scalar_lea.sflag [#allocation6], %s1391_s14 }
 0xaf7   : > { %p1690_p13 = pnand %p1701_p8, %p2474_p11 }
 0xaf9   : > { %1958 = dma.done.wait (!%p1690_p13), %s1392_s22, 128  }
 0xafa   : > { %1960 = vsyncadd (!%p1690_p13), %s1392_s22, 4294967168  ;;  %s2475_s28 = sld [smem:[#allocation20_spill]]  ;;  %s2476_s13 = sld [smem:[#allocation18_spill]] }
 0xafb   : > { %s2477_s27 = sld [smem:[#allocation21_spill]]  ;;  %s2478_s25 = smov %s1967_s26 }
 0xb00   : > { %p26_p1 = scmp.ge.s32.totalorder %s2475_s28, 4   ;;  %s2479_s26 = smov %s2476_s13 }
 0xb02   :  { %28 = sbr.rel (!%p26_p1) target bundleno = 8 (0x8), region = 126 }
 0xb09   :  { %1397 = vsyncpa [#allocation5], 1 }
 0xb0a   :  { %1399 = vsyncpa [#allocation5 + $0x1], 1 }
 0xb0b   :  { %1400 = vsyncpa [#allocation8], 1 }
 0xb0c   :  { %1401 = vsyncpa [#allocation11], 1 }
 0xb0d   :  { %1402 = vsyncpa [#allocation6], 1 }
 0xb0e   :  { %1404 = vsyncpa [#allocation6 + $0x1], 1 }

</bundles_post_ra>
